<compile_context>
chip_gen: v6e
topology: v6e:2x2x1
jax: 0.10.0
libtpu: 0.0.40
codegen_flags: <defaults>
</compile_context>

<pallas_src>
import functools

import jax
import jax.numpy as jnp
import numpy as np
from jax.experimental import pallas as pl
from jax.experimental.pallas import tpu as pltpu

BN_EPS = 1e-5
SQRT_HALF = np.float32(np.sqrt(0.5))


def _feat_transformer_kernel(*refs, n_layers, n_vb, vbs, output_dim, mxu_dtype):
    # refs = [x_ref, (w_ref, gamma_ref, beta_ref) * n_layers, o_ref]
    x_ref = refs[0]
    o_ref = refs[1 + 3 * n_layers]
    two_out = 2 * output_dim

    h = x_ref[...].astype(jnp.float32)          # (rows, in_dim); lives in VMEM

    for l in range(n_layers):                   # unrolled at trace time (small)
        w_ref = refs[1 + 3 * l]                 # (in_dim_l, 2*out) pre-transposed
        g_ref = refs[2 + 3 * l]                 # (1, 2*out) BN gamma
        b_ref = refs[3 + 3 * l]                 # (1, 2*out) BN beta

        # Linear (bias=False): one MXU matmul covering both GLU halves;
        # f32 accumulation.
        y = jnp.dot(h.astype(mxu_dtype), w_ref[...],
                    preferred_element_type=jnp.float32)        # (rows, 2*out)

        # Ghost BatchNorm (training mode): per-virtual-batch biased stats.
        # Single pass: sum(y) and sum(y*y) reductions are independent.
        y3 = y.reshape(n_vb, vbs, two_out)
        mean = jnp.mean(y3, axis=1, keepdims=True)             # (n_vb, 1, 2*out)
        mean_sq = jnp.mean(y3 * y3, axis=1, keepdims=True)
        var = jnp.maximum(mean_sq - mean * mean, 0.0)          # guard cancellation
        gamma = g_ref[...].reshape(1, 1, two_out)
        beta = b_ref[...].reshape(1, 1, two_out)
        scale = gamma * jax.lax.rsqrt(var + BN_EPS)            # gamma folded in
        shift = beta - mean * scale
        y_bn = (y3 * scale + shift).reshape(n_vb * vbs, two_out)

        # GLU: a * sigmoid(b)  (all elementwise math stays f32)
        glu = y_bn[:, :output_dim] * jax.nn.sigmoid(y_bn[:, output_dim:])

        if l == 0:
            h = glu                              # first layer: no residual
        else:
            h = (h + glu) * SQRT_HALF            # residual + sqrt(0.5) scale

    o_ref[...] = h.astype(o_ref.dtype)


def prepare_glu_chain_params(layers, mxu_dtype=jnp.bfloat16):
    """Pre-transpose / pre-cast GLU-layer params ONCE (when building the pytree).

    layers: list of (weight [2*out, in] PyTorch Linear layout, gamma [2*out],
    beta [2*out]) in chain order (shared layers first, then specific layers).
    """
    prepped = []
    for (w, g, b) in layers:
        two_out = w.shape[0]
        prepped.append((
            jnp.asarray(w, jnp.float32).T.astype(mxu_dtype),    # (in, 2*out)
            jnp.asarray(g, jnp.float32).reshape(1, two_out),
            jnp.asarray(b, jnp.float32).reshape(1, two_out),
        ))
    return prepped


def feat_transformer_forward(x, prepped_layers, *, output_dim, virtual_batch_size,
                             max_rows_per_block=2048):
    """Fused FeatTransformer forward (training-mode BN)."""
    if not prepped_layers:                       # Identity . Identity case
        return x

    B, input_dim = x.shape
    vbs = virtual_batch_size
    assert B % vbs == 0, "keep batch a multiple of virtual_batch_size"
    n_layers = len(prepped_layers)
    two_out = 2 * output_dim

    # Layer 0 consumes input_dim, every later layer consumes output_dim
    # (required for the residual h + glu).
    for l, (w, g, b) in enumerate(prepped_layers):
        in_l = input_dim if l == 0 else output_dim
        assert w.shape == (in_l, two_out), (l, w.shape)
        assert g.shape == (1, two_out) and b.shape == (1, two_out)
    mxu_dtype = prepped_layers[0][0].dtype

    # Row tiling: whole virtual batches per tile; large tiles amortize the
    # ~0.35us/grid-step overhead; keep >= 2 grid steps so v7x's two TensorCores
    # both get a share of the ("parallel",) axis; ragged last tile is allowed
    # (out-of-bounds rows only affect their own discarded virtual batches).
    n_vb = B // vbs
    n_vb_per_block = min(n_vb, max(1, max_rows_per_block // vbs))
    if n_vb >= 2:
        n_vb_per_block = min(n_vb_per_block, pl.cdiv(n_vb, 2))
    rows = n_vb_per_block * vbs
    assert rows % 8 == 0 or rows == B, (
        "row tile must be sublane-aligned: use a virtual_batch_size that is a "
        "multiple of 8 (or one full-batch tile)")
    grid = (pl.cdiv(n_vb, n_vb_per_block),)

    in_specs = [pl.BlockSpec((rows, input_dim), lambda i: (i, 0))]
    operands = [x]
    for (w, g, b) in prepped_layers:
        # Grid-invariant blocks (constant index_map) -> DMA'd once and reused.
        # TODO(synk): pin these to a single buffer (pl.Buffered(1)) if a very
        #             wide first shared layer ever makes them the VMEM driver.
        in_specs.append(pl.BlockSpec(w.shape, lambda i: (0, 0)))
        in_specs.append(pl.BlockSpec(g.shape, lambda i: (0, 0)))
        in_specs.append(pl.BlockSpec(b.shape, lambda i: (0, 0)))
        operands += [w, g, b]

    # VMEM budget: double-buffered x/out blocks + all layer params + working set.
    est = 2 * rows * input_dim * 4 + 2 * rows * output_dim * 4
    est += sum(2 * (w.size * w.dtype.itemsize + (g.size + b.size) * 4)
               for (w, g, b) in prepped_layers)
    est += 8 * rows * two_out * 4
    vmem_limit = int(min(64 << 20, max(32 << 20, 2 * est)))   # v7x-safe cap

    kernel = functools.partial(
        _feat_transformer_kernel,
        n_layers=n_layers, n_vb=n_vb_per_block, vbs=vbs,
        output_dim=output_dim, mxu_dtype=mxu_dtype)

    return pl.pallas_call(
        kernel,
        out_shape=jax.ShapeDtypeStruct((B, output_dim), x.dtype),
        grid_spec=pltpu.PrefetchScalarGridSpec(
            num_scalar_prefetch=0,
            grid=grid,
            in_specs=in_specs,
            out_specs=pl.BlockSpec((rows, output_dim), lambda i: (i, 0)),
        ),
        compiler_params=pltpu.CompilerParams(
            dimension_semantics=("parallel",),
            vmem_limit_bytes=vmem_limit,
        ),
    )(*operands)


# ----------------------------- pure-JAX reference -----------------------------

def _glu_layer_ref(x, weight, gamma, beta, output_dim, vbs):
    y = x @ weight.T
    n = y.shape[0] // vbs
    y3 = y.reshape(n, vbs, -1)
    m = jnp.mean(y3, axis=1, keepdims=True)
    v = jnp.mean((y3 - m) ** 2, axis=1, keepdims=True)
    ybn = ((y3 - m) / jnp.sqrt(v + BN_EPS) * gamma + beta).reshape(y.shape)
    return ybn[:, :output_dim] * jax.nn.sigmoid(ybn[:, output_dim:])


def _feat_transformer_ref(x, layers, output_dim, vbs):
    h = x
    first = True
    for (w, g, b) in layers:
        out = _glu_layer_ref(h, w, g, b, output_dim, vbs)
        h = out if first else (h + out) * SQRT_HALF
        first = False
    return h


# ------------------------------------ demo ------------------------------------

if __name__ == "__main__":
    input_dim = 32
    output_dim = 16
    n_shared = 2               # len(shared_layers)
    n_glu_independent = 2
    virtual_batch_size = 8
    batch = 64                 # 8 virtual batches -> 2 grid steps of 4 vbs each

    key = jax.random.PRNGKey(0)
    keys = jax.random.split(key, 1 + 2 * (n_shared + n_glu_independent))
    x = jax.random.normal(keys[0], (batch, input_dim), dtype=jnp.float32)

    def make_layer(kw, kb, in_dim, out_dim):
        # initialize_glu: xavier_normal_ with gain = sqrt((in + 2*out)/sqrt(in))
        fan_out = 2 * out_dim
        gain = np.sqrt((in_dim + fan_out) / np.sqrt(in_dim))
        std = np.float32(gain * np.sqrt(2.0 / (in_dim + fan_out)))
        w = std * jax.random.normal(kw, (fan_out, in_dim), dtype=jnp.float32)
        # PyTorch BatchNorm1d default is gamma=1, beta=0; randomize slightly to
        # exercise the folded BN-affine path.
        g = 1.0 + 0.1 * jax.random.normal(kb, (fan_out,), dtype=jnp.float32)
        b = 0.05 * jax.random.normal(jax.random.fold_in(kb, 1), (fan_out,),
                                     dtype=jnp.float32)
        return (w, g, b)

    layers = [make_layer(keys[1], keys[2], input_dim, output_dim)]
    for i in range(1, n_shared + n_glu_independent):
        layers.append(make_layer(keys[1 + 2 * i], keys[2 + 2 * i],
                                 output_dim, output_dim))

    ref = _feat_transformer_ref(x, layers, output_dim, virtual_batch_size)

    # f32-MXU path: strict check.
    prepped_f32 = prepare_glu_chain_params(layers, mxu_dtype=jnp.float32)
    out_f32 = feat_transformer_forward(
        x, prepped_f32, output_dim=output_dim,
        virtual_batch_size=virtual_batch_size)
    out_f32 = jax.block_until_ready(out_f32)
    np.testing.assert_allclose(np.asarray(out_f32), np.asarray(ref),
                               rtol=1e-3, atol=1e-3)

    # bf16-MXU path (default on all generations): bf16 matmul inputs with f32
    # accumulation; BN / sigmoid / residual stay f32, and BN re-normalizes each
    # layer, so the precision impact is small.  Loose sanity tolerance.
    prepped_bf16 = prepare_glu_chain_params(layers, mxu_dtype=jnp.bfloat16)
    out_bf16 = feat_transformer_forward(
        x, prepped_bf16, output_dim=output_dim,
        virtual_batch_size=virtual_batch_size)
    out_bf16 = jax.block_until_ready(out_bf16)
    np.testing.assert_allclose(np.asarray(out_bf16), np.asarray(ref),
                               rtol=2e-1, atol=2e-1)

    print("KERNEL_OK")
</pallas_src>

<mosaic_0001>
module attributes {stable_mosaic.version = 11 : i64} {
  func.func @_feat_transformer_kernel(%arg0: i32, %arg1: memref<32x32xf32, #tpu.memory_space<vmem>>, %arg2: memref<32x32xf32, #tpu.memory_space<vmem>>, %arg3: memref<1x32xf32, #tpu.memory_space<vmem>>, %arg4: memref<1x32xf32, #tpu.memory_space<vmem>>, %arg5: memref<16x32xf32, #tpu.memory_space<vmem>>, %arg6: memref<1x32xf32, #tpu.memory_space<vmem>>, %arg7: memref<1x32xf32, #tpu.memory_space<vmem>>, %arg8: memref<16x32xf32, #tpu.memory_space<vmem>>, %arg9: memref<1x32xf32, #tpu.memory_space<vmem>>, %arg10: memref<1x32xf32, #tpu.memory_space<vmem>>, %arg11: memref<16x32xf32, #tpu.memory_space<vmem>>, %arg12: memref<1x32xf32, #tpu.memory_space<vmem>>, %arg13: memref<1x32xf32, #tpu.memory_space<vmem>>, %arg14: memref<32x16xf32, #tpu.memory_space<vmem>>) attributes {dimension_semantics = [#tpu.dimension_semantics<parallel>], iteration_bounds = array<i64: 2>, scalar_prefetch = 0 : i64, scratch_operands = 0 : i64, tpu.core_type = #tpu.core_type<tc>, window_params = [{transform_indices = @transform_0, window_bounds = array<i64: 32, 32>}, {pipeline_mode = #tpu.pipeline_mode<synchronous>, transform_indices = @transform_1, window_bounds = array<i64: 32, 32>}, {pipeline_mode = #tpu.pipeline_mode<synchronous>, transform_indices = @transform_2, window_bounds = array<i64: 1, 32>}, {pipeline_mode = #tpu.pipeline_mode<synchronous>, transform_indices = @transform_3, window_bounds = array<i64: 1, 32>}, {pipeline_mode = #tpu.pipeline_mode<synchronous>, transform_indices = @transform_4, window_bounds = array<i64: 16, 32>}, {pipeline_mode = #tpu.pipeline_mode<synchronous>, transform_indices = @transform_5, window_bounds = array<i64: 1, 32>}, {pipeline_mode = #tpu.pipeline_mode<synchronous>, transform_indices = @transform_6, window_bounds = array<i64: 1, 32>}, {pipeline_mode = #tpu.pipeline_mode<synchronous>, transform_indices = @transform_7, window_bounds = array<i64: 16, 32>}, {pipeline_mode = #tpu.pipeline_mode<synchronous>, transform_indices = @transform_8, window_bounds = array<i64: 1, 32>}, {pipeline_mode = #tpu.pipeline_mode<synchronous>, transform_indices = @transform_9, window_bounds = array<i64: 1, 32>}, {pipeline_mode = #tpu.pipeline_mode<synchronous>, transform_indices = @transform_10, window_bounds = array<i64: 16, 32>}, {pipeline_mode = #tpu.pipeline_mode<synchronous>, transform_indices = @transform_11, window_bounds = array<i64: 1, 32>}, {pipeline_mode = #tpu.pipeline_mode<synchronous>, transform_indices = @transform_12, window_bounds = array<i64: 1, 32>}, {transform_indices = @transform_13, window_bounds = array<i64: 32, 16>}]} {
    %c0 = arith.constant 0 : index
    %c0_0 = arith.constant 0 : index
    %0 = vector.load %arg1[%c0, %c0_0] : memref<32x32xf32, #tpu.memory_space<vmem>>, vector<32x32xf32>
    %c0_1 = arith.constant 0 : index
    %c0_2 = arith.constant 0 : index
    %1 = vector.load %arg2[%c0_1, %c0_2] : memref<32x32xf32, #tpu.memory_space<vmem>>, vector<32x32xf32>
    %cst = arith.constant dense<0.000000e+00> : vector<32x32xf32>
    %2 = tpu.matmul %0, %1, %cst {dimension_numbers = #tpu.dot_dimension_numbers<[1], [0], [0], [1], [0, 0, 1, 1], [], []>} : vector<32x32xf32>, vector<32x32xf32>, vector<32x32xf32> -> vector<32x32xf32>
    %3 = vector.shape_cast %2 : vector<32x32xf32> to vector<4x8x32xf32>
    %cst_3 = arith.constant dense<0.000000e+00> : vector<4x32xf32>
    %4 = vector.multi_reduction <add>, %3, %cst_3 [1] : vector<4x8x32xf32> to vector<4x32xf32>
    %5 = vector.shape_cast %4 : vector<4x32xf32> to vector<4x1x32xf32>
    %cst_4 = arith.constant 8.000000e+00 : f32
    %6 = vector.broadcast %cst_4 : f32 to vector<4x1x32xf32>
    %7 = arith.divf %5, %6 : vector<4x1x32xf32>
    %8 = arith.mulf %3, %3 : vector<4x8x32xf32>
    %cst_5 = arith.constant dense<0.000000e+00> : vector<4x32xf32>
    %9 = vector.multi_reduction <add>, %8, %cst_5 [1] : vector<4x8x32xf32> to vector<4x32xf32>
    %10 = vector.shape_cast %9 : vector<4x32xf32> to vector<4x1x32xf32>
    %cst_6 = arith.constant 8.000000e+00 : f32
    %11 = vector.broadcast %cst_6 : f32 to vector<4x1x32xf32>
    %12 = arith.divf %10, %11 : vector<4x1x32xf32>
    %13 = arith.mulf %7, %7 : vector<4x1x32xf32>
    %14 = arith.subf %12, %13 : vector<4x1x32xf32>
    %cst_7 = arith.constant 0.000000e+00 : f32
    %15 = vector.broadcast %cst_7 : f32 to vector<4x1x32xf32>
    %16 = arith.maximumf %14, %15 : vector<4x1x32xf32>
    %c0_8 = arith.constant 0 : index
    %c0_9 = arith.constant 0 : index
    %17 = vector.load %arg3[%c0_8, %c0_9] : memref<1x32xf32, #tpu.memory_space<vmem>>, vector<1x32xf32>
    %18 = vector.shape_cast %17 : vector<1x32xf32> to vector<1x1x32xf32>
    %c0_10 = arith.constant 0 : index
    %c0_11 = arith.constant 0 : index
    %19 = vector.load %arg4[%c0_10, %c0_11] : memref<1x32xf32, #tpu.memory_space<vmem>>, vector<1x32xf32>
    %20 = vector.shape_cast %19 : vector<1x32xf32> to vector<1x1x32xf32>
    %cst_12 = arith.constant 9.99999974E-6 : f32
    %21 = vector.broadcast %cst_12 : f32 to vector<4x1x32xf32>
    %22 = arith.addf %16, %21 : vector<4x1x32xf32>
    %23 = math.rsqrt %22 : vector<4x1x32xf32>
    %24 = vector.broadcast %18 : vector<1x1x32xf32> to vector<4x1x32xf32>
    %25 = arith.mulf %24, %23 : vector<4x1x32xf32>
    %26 = arith.mulf %7, %25 : vector<4x1x32xf32>
    %27 = vector.broadcast %20 : vector<1x1x32xf32> to vector<4x1x32xf32>
    %28 = arith.subf %27, %26 : vector<4x1x32xf32>
    %29 = vector.broadcast %25 : vector<4x1x32xf32> to vector<4x8x32xf32>
    %30 = arith.mulf %3, %29 : vector<4x8x32xf32>
    %31 = vector.broadcast %28 : vector<4x1x32xf32> to vector<4x8x32xf32>
    %32 = arith.addf %30, %31 : vector<4x8x32xf32>
    %33 = vector.shape_cast %32 : vector<4x8x32xf32> to vector<32x32xf32>
    %34 = vector.extract_strided_slice %33 {offsets = [0, 0], sizes = [32, 16], strides = [1, 1]} : vector<32x32xf32> to vector<32x16xf32>
    %35 = vector.extract_strided_slice %33 {offsets = [0, 16], sizes = [32, 16], strides = [1, 1]} : vector<32x32xf32> to vector<32x16xf32>
    %36 = arith.negf %35 : vector<32x16xf32>
    %37 = math.exp %36 : vector<32x16xf32>
    %cst_13 = arith.constant 1.000000e+00 : f32
    %38 = vector.broadcast %cst_13 : f32 to vector<32x16xf32>
    %39 = arith.addf %38, %37 : vector<32x16xf32>
    %40 = arith.divf %38, %39 : vector<32x16xf32>
    %41 = arith.mulf %34, %40 : vector<32x16xf32>
    %c0_14 = arith.constant 0 : index
    %c0_15 = arith.constant 0 : index
    %42 = vector.load %arg5[%c0_14, %c0_15] : memref<16x32xf32, #tpu.memory_space<vmem>>, vector<16x32xf32>
    %cst_16 = arith.constant dense<0.000000e+00> : vector<32x32xf32>
    %43 = tpu.matmul %41, %42, %cst_16 {dimension_numbers = #tpu.dot_dimension_numbers<[1], [0], [0], [1], [0, 0, 1, 1], [], []>} : vector<32x16xf32>, vector<16x32xf32>, vector<32x32xf32> -> vector<32x32xf32>
    %44 = vector.shape_cast %43 : vector<32x32xf32> to vector<4x8x32xf32>
    %cst_17 = arith.constant dense<0.000000e+00> : vector<4x32xf32>
    %45 = vector.multi_reduction <add>, %44, %cst_17 [1] : vector<4x8x32xf32> to vector<4x32xf32>
    %46 = vector.shape_cast %45 : vector<4x32xf32> to vector<4x1x32xf32>
    %cst_18 = arith.constant 8.000000e+00 : f32
    %47 = vector.broadcast %cst_18 : f32 to vector<4x1x32xf32>
    %48 = arith.divf %46, %47 : vector<4x1x32xf32>
    %49 = arith.mulf %44, %44 : vector<4x8x32xf32>
    %cst_19 = arith.constant dense<0.000000e+00> : vector<4x32xf32>
    %50 = vector.multi_reduction <add>, %49, %cst_19 [1] : vector<4x8x32xf32> to vector<4x32xf32>
    %51 = vector.shape_cast %50 : vector<4x32xf32> to vector<4x1x32xf32>
    %cst_20 = arith.constant 8.000000e+00 : f32
    %52 = vector.broadcast %cst_20 : f32 to vector<4x1x32xf32>
    %53 = arith.divf %51, %52 : vector<4x1x32xf32>
    %54 = arith.mulf %48, %48 : vector<4x1x32xf32>
    %55 = arith.subf %53, %54 : vector<4x1x32xf32>
    %cst_21 = arith.constant 0.000000e+00 : f32
    %56 = vector.broadcast %cst_21 : f32 to vector<4x1x32xf32>
    %57 = arith.maximumf %55, %56 : vector<4x1x32xf32>
    %c0_22 = arith.constant 0 : index
    %c0_23 = arith.constant 0 : index
    %58 = vector.load %arg6[%c0_22, %c0_23] : memref<1x32xf32, #tpu.memory_space<vmem>>, vector<1x32xf32>
    %59 = vector.shape_cast %58 : vector<1x32xf32> to vector<1x1x32xf32>
    %c0_24 = arith.constant 0 : index
    %c0_25 = arith.constant 0 : index
    %60 = vector.load %arg7[%c0_24, %c0_25] : memref<1x32xf32, #tpu.memory_space<vmem>>, vector<1x32xf32>
    %61 = vector.shape_cast %60 : vector<1x32xf32> to vector<1x1x32xf32>
    %cst_26 = arith.constant 9.99999974E-6 : f32
    %62 = vector.broadcast %cst_26 : f32 to vector<4x1x32xf32>
    %63 = arith.addf %57, %62 : vector<4x1x32xf32>
    %64 = math.rsqrt %63 : vector<4x1x32xf32>
    %65 = vector.broadcast %59 : vector<1x1x32xf32> to vector<4x1x32xf32>
    %66 = arith.mulf %65, %64 : vector<4x1x32xf32>
    %67 = arith.mulf %48, %66 : vector<4x1x32xf32>
    %68 = vector.broadcast %61 : vector<1x1x32xf32> to vector<4x1x32xf32>
    %69 = arith.subf %68, %67 : vector<4x1x32xf32>
    %70 = vector.broadcast %66 : vector<4x1x32xf32> to vector<4x8x32xf32>
    %71 = arith.mulf %44, %70 : vector<4x8x32xf32>
    %72 = vector.broadcast %69 : vector<4x1x32xf32> to vector<4x8x32xf32>
    %73 = arith.addf %71, %72 : vector<4x8x32xf32>
    %74 = vector.shape_cast %73 : vector<4x8x32xf32> to vector<32x32xf32>
    %75 = vector.extract_strided_slice %74 {offsets = [0, 0], sizes = [32, 16], strides = [1, 1]} : vector<32x32xf32> to vector<32x16xf32>
    %76 = vector.extract_strided_slice %74 {offsets = [0, 16], sizes = [32, 16], strides = [1, 1]} : vector<32x32xf32> to vector<32x16xf32>
    %77 = arith.negf %76 : vector<32x16xf32>
    %78 = math.exp %77 : vector<32x16xf32>
    %cst_27 = arith.constant 1.000000e+00 : f32
    %79 = vector.broadcast %cst_27 : f32 to vector<32x16xf32>
    %80 = arith.addf %79, %78 : vector<32x16xf32>
    %81 = arith.divf %79, %80 : vector<32x16xf32>
    %82 = arith.mulf %75, %81 : vector<32x16xf32>
    %83 = arith.addf %41, %82 : vector<32x16xf32>
    %cst_28 = arith.constant 0.707106769 : f32
    %84 = vector.broadcast %cst_28 : f32 to vector<32x16xf32>
    %85 = arith.mulf %83, %84 : vector<32x16xf32>
    %c0_29 = arith.constant 0 : index
    %c0_30 = arith.constant 0 : index
    %86 = vector.load %arg8[%c0_29, %c0_30] : memref<16x32xf32, #tpu.memory_space<vmem>>, vector<16x32xf32>
    %cst_31 = arith.constant dense<0.000000e+00> : vector<32x32xf32>
    %87 = tpu.matmul %85, %86, %cst_31 {dimension_numbers = #tpu.dot_dimension_numbers<[1], [0], [0], [1], [0, 0, 1, 1], [], []>} : vector<32x16xf32>, vector<16x32xf32>, vector<32x32xf32> -> vector<32x32xf32>
    %88 = vector.shape_cast %87 : vector<32x32xf32> to vector<4x8x32xf32>
    %cst_32 = arith.constant dense<0.000000e+00> : vector<4x32xf32>
    %89 = vector.multi_reduction <add>, %88, %cst_32 [1] : vector<4x8x32xf32> to vector<4x32xf32>
    %90 = vector.shape_cast %89 : vector<4x32xf32> to vector<4x1x32xf32>
    %cst_33 = arith.constant 8.000000e+00 : f32
    %91 = vector.broadcast %cst_33 : f32 to vector<4x1x32xf32>
    %92 = arith.divf %90, %91 : vector<4x1x32xf32>
    %93 = arith.mulf %88, %88 : vector<4x8x32xf32>
    %cst_34 = arith.constant dense<0.000000e+00> : vector<4x32xf32>
    %94 = vector.multi_reduction <add>, %93, %cst_34 [1] : vector<4x8x32xf32> to vector<4x32xf32>
    %95 = vector.shape_cast %94 : vector<4x32xf32> to vector<4x1x32xf32>
    %cst_35 = arith.constant 8.000000e+00 : f32
    %96 = vector.broadcast %cst_35 : f32 to vector<4x1x32xf32>
    %97 = arith.divf %95, %96 : vector<4x1x32xf32>
    %98 = arith.mulf %92, %92 : vector<4x1x32xf32>
    %99 = arith.subf %97, %98 : vector<4x1x32xf32>
    %cst_36 = arith.constant 0.000000e+00 : f32
    %100 = vector.broadcast %cst_36 : f32 to vector<4x1x32xf32>
    %101 = arith.maximumf %99, %100 : vector<4x1x32xf32>
    %c0_37 = arith.constant 0 : index
    %c0_38 = arith.constant 0 : index
    %102 = vector.load %arg9[%c0_37, %c0_38] : memref<1x32xf32, #tpu.memory_space<vmem>>, vector<1x32xf32>
    %103 = vector.shape_cast %102 : vector<1x32xf32> to vector<1x1x32xf32>
    %c0_39 = arith.constant 0 : index
    %c0_40 = arith.constant 0 : index
    %104 = vector.load %arg10[%c0_39, %c0_40] : memref<1x32xf32, #tpu.memory_space<vmem>>, vector<1x32xf32>
    %105 = vector.shape_cast %104 : vector<1x32xf32> to vector<1x1x32xf32>
    %cst_41 = arith.constant 9.99999974E-6 : f32
    %106 = vector.broadcast %cst_41 : f32 to vector<4x1x32xf32>
    %107 = arith.addf %101, %106 : vector<4x1x32xf32>
    %108 = math.rsqrt %107 : vector<4x1x32xf32>
    %109 = vector.broadcast %103 : vector<1x1x32xf32> to vector<4x1x32xf32>
    %110 = arith.mulf %109, %108 : vector<4x1x32xf32>
    %111 = arith.mulf %92, %110 : vector<4x1x32xf32>
    %112 = vector.broadcast %105 : vector<1x1x32xf32> to vector<4x1x32xf32>
    %113 = arith.subf %112, %111 : vector<4x1x32xf32>
    %114 = vector.broadcast %110 : vector<4x1x32xf32> to vector<4x8x32xf32>
    %115 = arith.mulf %88, %114 : vector<4x8x32xf32>
    %116 = vector.broadcast %113 : vector<4x1x32xf32> to vector<4x8x32xf32>
    %117 = arith.addf %115, %116 : vector<4x8x32xf32>
    %118 = vector.shape_cast %117 : vector<4x8x32xf32> to vector<32x32xf32>
    %119 = vector.extract_strided_slice %118 {offsets = [0, 0], sizes = [32, 16], strides = [1, 1]} : vector<32x32xf32> to vector<32x16xf32>
    %120 = vector.extract_strided_slice %118 {offsets = [0, 16], sizes = [32, 16], strides = [1, 1]} : vector<32x32xf32> to vector<32x16xf32>
    %121 = arith.negf %120 : vector<32x16xf32>
    %122 = math.exp %121 : vector<32x16xf32>
    %cst_42 = arith.constant 1.000000e+00 : f32
    %123 = vector.broadcast %cst_42 : f32 to vector<32x16xf32>
    %124 = arith.addf %123, %122 : vector<32x16xf32>
    %125 = arith.divf %123, %124 : vector<32x16xf32>
    %126 = arith.mulf %119, %125 : vector<32x16xf32>
    %127 = arith.addf %85, %126 : vector<32x16xf32>
    %cst_43 = arith.constant 0.707106769 : f32
    %128 = vector.broadcast %cst_43 : f32 to vector<32x16xf32>
    %129 = arith.mulf %127, %128 : vector<32x16xf32>
    %c0_44 = arith.constant 0 : index
    %c0_45 = arith.constant 0 : index
    %130 = vector.load %arg11[%c0_44, %c0_45] : memref<16x32xf32, #tpu.memory_space<vmem>>, vector<16x32xf32>
    %cst_46 = arith.constant dense<0.000000e+00> : vector<32x32xf32>
    %131 = tpu.matmul %129, %130, %cst_46 {dimension_numbers = #tpu.dot_dimension_numbers<[1], [0], [0], [1], [0, 0, 1, 1], [], []>} : vector<32x16xf32>, vector<16x32xf32>, vector<32x32xf32> -> vector<32x32xf32>
    %132 = vector.shape_cast %131 : vector<32x32xf32> to vector<4x8x32xf32>
    %cst_47 = arith.constant dense<0.000000e+00> : vector<4x32xf32>
    %133 = vector.multi_reduction <add>, %132, %cst_47 [1] : vector<4x8x32xf32> to vector<4x32xf32>
    %134 = vector.shape_cast %133 : vector<4x32xf32> to vector<4x1x32xf32>
    %cst_48 = arith.constant 8.000000e+00 : f32
    %135 = vector.broadcast %cst_48 : f32 to vector<4x1x32xf32>
    %136 = arith.divf %134, %135 : vector<4x1x32xf32>
    %137 = arith.mulf %132, %132 : vector<4x8x32xf32>
    %cst_49 = arith.constant dense<0.000000e+00> : vector<4x32xf32>
    %138 = vector.multi_reduction <add>, %137, %cst_49 [1] : vector<4x8x32xf32> to vector<4x32xf32>
    %139 = vector.shape_cast %138 : vector<4x32xf32> to vector<4x1x32xf32>
    %cst_50 = arith.constant 8.000000e+00 : f32
    %140 = vector.broadcast %cst_50 : f32 to vector<4x1x32xf32>
    %141 = arith.divf %139, %140 : vector<4x1x32xf32>
    %142 = arith.mulf %136, %136 : vector<4x1x32xf32>
    %143 = arith.subf %141, %142 : vector<4x1x32xf32>
    %cst_51 = arith.constant 0.000000e+00 : f32
    %144 = vector.broadcast %cst_51 : f32 to vector<4x1x32xf32>
    %145 = arith.maximumf %143, %144 : vector<4x1x32xf32>
    %c0_52 = arith.constant 0 : index
    %c0_53 = arith.constant 0 : index
    %146 = vector.load %arg12[%c0_52, %c0_53] : memref<1x32xf32, #tpu.memory_space<vmem>>, vector<1x32xf32>
    %147 = vector.shape_cast %146 : vector<1x32xf32> to vector<1x1x32xf32>
    %c0_54 = arith.constant 0 : index
    %c0_55 = arith.constant 0 : index
    %148 = vector.load %arg13[%c0_54, %c0_55] : memref<1x32xf32, #tpu.memory_space<vmem>>, vector<1x32xf32>
    %149 = vector.shape_cast %148 : vector<1x32xf32> to vector<1x1x32xf32>
    %cst_56 = arith.constant 9.99999974E-6 : f32
    %150 = vector.broadcast %cst_56 : f32 to vector<4x1x32xf32>
    %151 = arith.addf %145, %150 : vector<4x1x32xf32>
    %152 = math.rsqrt %151 : vector<4x1x32xf32>
    %153 = vector.broadcast %147 : vector<1x1x32xf32> to vector<4x1x32xf32>
    %154 = arith.mulf %153, %152 : vector<4x1x32xf32>
    %155 = arith.mulf %136, %154 : vector<4x1x32xf32>
    %156 = vector.broadcast %149 : vector<1x1x32xf32> to vector<4x1x32xf32>
    %157 = arith.subf %156, %155 : vector<4x1x32xf32>
    %158 = vector.broadcast %154 : vector<4x1x32xf32> to vector<4x8x32xf32>
    %159 = arith.mulf %132, %158 : vector<4x8x32xf32>
    %160 = vector.broadcast %157 : vector<4x1x32xf32> to vector<4x8x32xf32>
    %161 = arith.addf %159, %160 : vector<4x8x32xf32>
    %162 = vector.shape_cast %161 : vector<4x8x32xf32> to vector<32x32xf32>
    %163 = vector.extract_strided_slice %162 {offsets = [0, 0], sizes = [32, 16], strides = [1, 1]} : vector<32x32xf32> to vector<32x16xf32>
    %164 = vector.extract_strided_slice %162 {offsets = [0, 16], sizes = [32, 16], strides = [1, 1]} : vector<32x32xf32> to vector<32x16xf32>
    %165 = arith.negf %164 : vector<32x16xf32>
    %166 = math.exp %165 : vector<32x16xf32>
    %cst_57 = arith.constant 1.000000e+00 : f32
    %167 = vector.broadcast %cst_57 : f32 to vector<32x16xf32>
    %168 = arith.addf %167, %166 : vector<32x16xf32>
    %169 = arith.divf %167, %168 : vector<32x16xf32>
    %170 = arith.mulf %163, %169 : vector<32x16xf32>
    %171 = arith.addf %129, %170 : vector<32x16xf32>
    %cst_58 = arith.constant 0.707106769 : f32
    %172 = vector.broadcast %cst_58 : f32 to vector<32x16xf32>
    %173 = arith.mulf %171, %172 : vector<32x16xf32>
    %c0_59 = arith.constant 0 : index
    %c0_60 = arith.constant 0 : index
    %174 = vector.load %arg14[%c0_59, %c0_60] : memref<32x16xf32, #tpu.memory_space<vmem>>, vector<32x16xf32>
    tpu.vector_store %arg14[%c0_59, %c0_60], %173 {strides = array<i32>} : memref<32x16xf32, #tpu.memory_space<vmem>>, vector<32x16xf32>,
    return
  }
  func.func @transform_0(%arg0: i32) -> (i32, i32) {
    %c0_i32 = arith.constant 0 : i32
    %c0_i32_0 = arith.constant 0 : i32
    return %arg0, %c0_i32 : i32, i32
  }
  func.func @transform_1(%arg0: i32) -> (i32, i32) {
    %c0_i32 = arith.constant 0 : i32
    %c0_i32_0 = arith.constant 0 : i32
    %c0_i32_1 = arith.constant 0 : i32
    return %c0_i32, %c0_i32_0 : i32, i32
  }
  func.func @transform_2(%arg0: i32) -> (i32, i32) {
    %c0_i32 = arith.constant 0 : i32
    %c0_i32_0 = arith.constant 0 : i32
    %c0_i32_1 = arith.constant 0 : i32
    return %c0_i32, %c0_i32_0 : i32, i32
  }
  func.func @transform_3(%arg0: i32) -> (i32, i32) {
    %c0_i32 = arith.constant 0 : i32
    %c0_i32_0 = arith.constant 0 : i32
    %c0_i32_1 = arith.constant 0 : i32
    return %c0_i32, %c0_i32_0 : i32, i32
  }
  func.func @transform_4(%arg0: i32) -> (i32, i32) {
    %c0_i32 = arith.constant 0 : i32
    %c0_i32_0 = arith.constant 0 : i32
    %c0_i32_1 = arith.constant 0 : i32
    return %c0_i32, %c0_i32_0 : i32, i32
  }
  func.func @transform_5(%arg0: i32) -> (i32, i32) {
    %c0_i32 = arith.constant 0 : i32
    %c0_i32_0 = arith.constant 0 : i32
    %c0_i32_1 = arith.constant 0 : i32
    return %c0_i32, %c0_i32_0 : i32, i32
  }
  func.func @transform_6(%arg0: i32) -> (i32, i32) {
    %c0_i32 = arith.constant 0 : i32
    %c0_i32_0 = arith.constant 0 : i32
    %c0_i32_1 = arith.constant 0 : i32
    return %c0_i32, %c0_i32_0 : i32, i32
  }
  func.func @transform_7(%arg0: i32) -> (i32, i32) {
    %c0_i32 = arith.constant 0 : i32
    %c0_i32_0 = arith.constant 0 : i32
    %c0_i32_1 = arith.constant 0 : i32
    return %c0_i32, %c0_i32_0 : i32, i32
  }
  func.func @transform_8(%arg0: i32) -> (i32, i32) {
    %c0_i32 = arith.constant 0 : i32
    %c0_i32_0 = arith.constant 0 : i32
    %c0_i32_1 = arith.constant 0 : i32
    return %c0_i32, %c0_i32_0 : i32, i32
  }
  func.func @transform_9(%arg0: i32) -> (i32, i32) {
    %c0_i32 = arith.constant 0 : i32
    %c0_i32_0 = arith.constant 0 : i32
    %c0_i32_1 = arith.constant 0 : i32
    return %c0_i32, %c0_i32_0 : i32, i32
  }
  func.func @transform_10(%arg0: i32) -> (i32, i32) {
    %c0_i32 = arith.constant 0 : i32
    %c0_i32_0 = arith.constant 0 : i32
    %c0_i32_1 = arith.constant 0 : i32
    return %c0_i32, %c0_i32_0 : i32, i32
  }
  func.func @transform_11(%arg0: i32) -> (i32, i32) {
    %c0_i32 = arith.constant 0 : i32
    %c0_i32_0 = arith.constant 0 : i32
    %c0_i32_1 = arith.constant 0 : i32
    return %c0_i32, %c0_i32_0 : i32, i32
  }
  func.func @transform_12(%arg0: i32) -> (i32, i32) {
    %c0_i32 = arith.constant 0 : i32
    %c0_i32_0 = arith.constant 0 : i32
    %c0_i32_1 = arith.constant 0 : i32
    return %c0_i32, %c0_i32_0 : i32, i32
  }
  func.func @transform_13(%arg0: i32) -> (i32, i32) {
    %c0_i32 = arith.constant 0 : i32
    %c0_i32_0 = arith.constant 0 : i32
    return %arg0, %c0_i32 : i32, i32
  }
}

</mosaic_0001>

<bundles_post_ra>
// kernel: tpu_custom_call.1
= control target key start
LH: loop header
LB: loop body
LE: loop exit
PB: predicated region body
PF: predicated region fallthrough
CT: control target
= control target key end

     0   :  { %s2038_s25 = smov 0   ;;  %s2362_s0 = inlined_call_operand.vmem [shape: f32[64,32], index: 0, kind: input, shape index: {}]   ;;  %s2363_s1 = inlined_call_operand.vmem [shape: f32[32,32], index: 1, kind: input, shape index: {}]   ;;  %s2364_s2 = inlined_call_operand.vmem [shape: f32[1,32], index: 2, kind: input, shape index: {}]   ;;  %s2365_s3 = inlined_call_operand.vmem [shape: f32[1,32], index: 3, kind: input, shape index: {}]   ;;  %s2366_s4 = inlined_call_operand.vmem [shape: f32[16,32], index: 4, kind: input, shape index: {}]   ;;  %s2367_s5 = inlined_call_operand.vmem [shape: f32[1,32], index: 5, kind: input, shape index: {}]   ;;  %s2368_s6 = inlined_call_operand.vmem [shape: f32[1,32], index: 6, kind: input, shape index: {}]   ;;  %s2369_s7 = inlined_call_operand.vmem [shape: f32[16,32], index: 7, kind: input, shape index: {}]   ;;  %s2370_s8 = inlined_call_operand.vmem [shape: f32[1,32], index: 8, kind: input, shape index: {}]   ;;  %s2371_s9 = inlined_call_operand.vmem [shape: f32[1,32], index: 9, kind: input, shape index: {}]   ;;  %s2372_s10 = inlined_call_operand.vmem [shape: f32[16,32], index: 10, kind: input, shape index: {}]   ;;  %s2373_s11 = inlined_call_operand.vmem [shape: f32[1,32], index: 11, kind: input, shape index: {}]   ;;  %s2374_s12 = inlined_call_operand.vmem [shape: f32[1,32], index: 12, kind: input, shape index: {}]   ;;  %s2375_s13 = inlined_call_operand.vmem [shape: f32[64,16], index: 13, kind: output, shape index: {}]  }
   0x1 LB: > { %s1741_s26 = sadd.s32 4294967295, %s1965_s25   ;;  %p1745_p0 = scmp.ge.s32.totalorder %s1965_s25, 1  ;;  %s1965_s25 = sphi %s2038_s25, %s23_s25  }
   0x2   : > { %p388_p1 = scmp.lt.s32.totalorder %s1965_s25, 3 }
   0x4   : > { %p389_p2 = pnand %p1745_p0, %p388_p1 }
   0x5   : > { %s1746_s14 = sshll.u32 (!%p389_p2), %s1741_s26, 2  ;;  %s1967_s16 = smov (!%p389_p2), 112  }
   0x6   : > { %392 = sbr.rel (%p389_p2) target bundleno = 1614 (0x64e), region = 72  ;;  %p433_p3 = scmp.lt.s32.totalorder (!%p389_p2), %s1746_s14, 7 }
   0xb   : > { %v451_v0 = vld [vmem:[%s2363_s1 + $0x18] sm:$0xff]  ;;  %v450_v1 = vld [vmem:[%s2363_s1 + $0x10] sm:$0xff]  ;;  %v449_v2 = vld [vmem:[%s2363_s1 + $0x8] sm:$0xff]  ;;  %s2377_s14 = smov (!%p433_p3, %s1746_s14), 7  ;;  %vm452_vm0 = vcmask 261120   ;;  %vm755_vm1 = vcmask 130048  }
   0xc   : > { %1810 = vmatprep.subr.mxu0 %v451_v0  ;;  %v448_v3 = vld [vmem:[%s2363_s1] sm:$0xff]  ;;  %s1747_s19 = sshll.u32 %s2377_s14, 3 }
   0xd   : > { %1811 = vmatpush3.msra.mxu0 %v451_v0  ;;  %s436_s22 = scalar_lea.vmem %s2362_s0, %s1747_s19  ;;  %s442_s28 = scalar_lea.vmem %s2375_s13, %s1747_s19 }
   0xe   : > { %1812 = vmatprep.subr.mxu0 %v450_v1  ;;  %v444_v4 = vld [vmem:[%s436_s22] sm:$0xff]  ;;  %v445_v5 = vld [vmem:[%s436_s22 + $0x8] sm:$0xff]  ;;  %v446_v6 = vld [vmem:[%s436_s22 + $0x10] sm:$0xff] }
   0xf   : > { %1813 = vmatpush3.msra.mxu0 %v450_v1  ;;  %1818 = vmatprep.mubr.msk.f32.mxu0 %vm452_vm0, %v444_v4  ;;  %v447_v7 = vld [vmem:[%s436_s22 + $0x18] sm:$0xff] }
  0x10   : > { %1814 = vmatprep.subr.mxu0 %v449_v2 }
  0x11   : > { %1815 = vmatpush3.msra.mxu0 %v449_v2 }
  0x12   : > { %1816 = vmatprep.subr.mxu0 %v448_v3 }
  0x13   : > { %1817 = vmatpush3.msra.mxu0 %v448_v3 }
  0x14   : > { %1819 = vmatmul.mubr.msk.f32.vlgmr.msra.gmra.mxu0 %vm452_vm0, %v445_v5 }
  0x15   : > { %1821 = vmatprep.mubr.msk.f32.mxu0 %vm452_vm0, %v446_v6 }
  0x18   : > { %1822 = vmatmul.mubr.msk.f32.gmra.mxu0 %vm452_vm0, %v447_v7 }
  0xd4   : > { %v2070_v8 = vpop.f32.mrf.mxu0 }
  0xd5   : > { %v557_v9 = vsel %vm452_vm0, %v2070_v8, 0.0  ;;  %v584_v10 = vmul.f32 %v2070_v8, %v2070_v8 }
  0xd6   : > { %v558_v11 = vrot.slane %v557_v9, 4  ;;  %v2076_v12 = vpop.f32.mrf.mxu0 }
  0xd7   : > { %v594_v13 = vsel %vm452_vm0, %v584_v10, 0.0  ;;  %v550_v14 = vsel %vm452_vm0, %v2076_v12, 0.0  ;;  %v583_v15 = vmul.f32 %v2076_v12, %v2076_v12 }
  0xd8   : > { %v559_v16 = vadd.f32 %v558_v11, %v557_v9  ;;  %v595_v17 = vrot.slane %v594_v13, 4  ;;  %v551_v18 = vrot.slane %v550_v14, 4  ;;  %v2083_v19 = vpop.f32.mrf.mxu0 }
  0xd9   : > { %v587_v20 = vsel %vm452_vm0, %v583_v15, 0.0  ;;  %v571_v21 = vsel %vm452_vm0, %v2083_v19, 0.0  ;;  %v586_v22 = vmul.f32 %v2083_v19, %v2083_v19 }
  0xda   : > { %v560_v23 = vrot.slane %v559_v16, 2  ;;  %v596_v24 = vadd.f32 %v595_v17, %v594_v13  ;;  %v552_v25 = vadd.f32 %v551_v18, %v550_v14  ;;  %v588_v26 = vrot.slane %v587_v20, 4  ;;  %v2090_v27 = vpop.f32.mrf.mxu0 }
  0xdb   : > { %v572_v28 = vrot.slane %v571_v21, 4  ;;  %v608_v29 = vsel %vm452_vm0, %v586_v22, 0.0  ;;  %v564_v30 = vsel %vm452_vm0, %v2090_v27, 0.0  ;;  %v585_v31 = vmul.f32 %v2090_v27, %v2090_v27 }
  0xdc   : > { %v561_v32 = vadd.f32 %v560_v23, %v559_v16  ;;  %v597_v33 = vrot.slane %v596_v24, 2  ;;  %v553_v34 = vrot.slane %v552_v25, 2  ;;  %v589_v35 = vadd.f32 %v588_v26, %v587_v20 }
  0xdd   : > { %v573_v36 = vadd.f32 %v572_v28, %v571_v21  ;;  %v609_v37 = vrot.slane %v608_v29, 4  ;;  %v565_v38 = vrot.slane %v564_v30, 4  ;;  %v601_v39 = vsel %vm452_vm0, %v585_v31, 0.0 }
  0xde   : > { %v562_v40 = vrot.slane %v561_v32, 1  ;;  %v598_v41 = vadd.f32 %v597_v33, %v596_v24  ;;  %v554_v42 = vadd.f32 %v553_v34, %v552_v25  ;;  %v590_v43 = vrot.slane %v589_v35, 2 }
  0xdf   : > { %v574_v44 = vrot.slane %v573_v36, 2  ;;  %v610_v45 = vadd.f32 %v609_v37, %v608_v29  ;;  %v566_v46 = vadd.f32 %v565_v38, %v564_v30  ;;  %v602_v47 = vrot.slane %v601_v39, 4  ;;  %v631_v38 = vld [vmem:[%s2364_s2] sm:$0x1] }
  0xe0   : > { %v563_v48 = vadd.f32 %v562_v40, %v561_v32  ;;  %v599_v49 = vrot.slane %v598_v41, 1  ;;  %v555_v50 = vrot.slane %v554_v42, 1  ;;  %v591_v51 = vadd.f32 %v590_v43, %v589_v35  ;;  %v632_v43 = vld [vmem:[%s2365_s3] sm:$0x1] }
  0xe1   : > { %v575_v52 = vadd.f32 %v574_v44, %v573_v36  ;;  %v611_v53 = vrot.slane %v610_v45, 2  ;;  %v567_v54 = vrot.slane %v566_v46, 2  ;;  %v603_v55 = vadd.f32 %v602_v47, %v601_v39 }
  0xe2   : > { %v580_v56 = vmul.f32 0.125, %v563_v48  ;;  %v600_v57 = vadd.f32 %v599_v49, %v598_v41  ;;  %v556_v58 = vadd.f32 %v555_v50, %v554_v42  ;;  %v592_v59 = vrot.slane %v591_v51, 1 }
  0xe3   : > { %v576_v60 = vrot.slane %v575_v52, 1  ;;  %v612_v61 = vadd.f32 %v611_v53, %v610_v45  ;;  %v568_v62 = vadd.f32 %v567_v54, %v566_v46  ;;  %v604_v63 = vrot.slane %v603_v55, 2 }
  0xe4   : > { %v616_v0 = vmul.f32 0.125, %v600_v57  ;;  %v620_v1 = vmul.f32 %v580_v56, %v580_v56  ;;  %v579_v2 = vmul.f32 0.125, %v556_v58  ;;  %v593_v3 = vadd.f32 %v592_v59, %v591_v51 }
  0xe5   : > { %v577_v4 = vadd.f32 %v576_v60, %v575_v52  ;;  %v613_v5 = vrot.slane %v612_v61, 1  ;;  %v569_v6 = vrot.slane %v568_v62, 1  ;;  %v605_v7 = vadd.f32 %v604_v63, %v603_v55 }
  0xe6   : > { %v624_v9 = vsub.f32 %v616_v0, %v620_v1  ;;  %v615_v10 = vmul.f32 0.125, %v593_v3  ;;  %v619_v11 = vmul.f32 %v579_v2, %v579_v2  ;;  %v657_v35 = vlaneseq }
  0xe7   : > { %v582_v13 = vmul.f32 0.125, %v577_v4  ;;  %v614_v14 = vadd.f32 %v613_v5, %v612_v61  ;;  %v570_v15 = vadd.f32 %v569_v6, %v568_v62  ;;  %v606_v16 = vrot.slane %v605_v7, 1 }
  0xe8   : > { %v628_v17 = vmax.f32 %v624_v9, 0.0  ;;  %v623_v18 = vsub.f32 %v615_v10, %v619_v11  ;;  %v658_v37 = vshrl.u32 %v657_v35, 7 }
  0xe9   : > { %v618_v20 = vmul.f32 0.125, %v614_v14  ;;  %v622_v21 = vmul.f32 %v582_v13, %v582_v13  ;;  %v581_v22 = vmul.f32 0.125, %v570_v15  ;;  %v607_v23 = vadd.f32 %v606_v16, %v605_v7 }
  0xea   : > { %v634_v24 = vadd.f32 1e-05, %v628_v17  ;;  %v627_v25 = vmax.f32 %v623_v18, 0.0  ;;  %v2101_v39 = vsub.s32 0, %v658_v37  ;;  %v754_v17 = vld [vmem:[%s2366_s4 + $0x8] sm:$0xff] }
  0xeb   : > { %v626_v26 = vsub.f32 %v618_v20, %v622_v21  ;;  %v617_v28 = vmul.f32 0.125, %v607_v23  ;;  %v621_v29 = vmul.f32 %v581_v22, %v581_v22  ;;  %1824 = vmatprep.subr.mxu1 %v754_v17  ;;  %v753_v21 = vld [vmem:[%s2366_s4] sm:$0xff] }
  0xec   : > { %1863 = vrsqrt.f32 %v634_v24  ;;  %v633_v30 = vadd.f32 1e-05, %v627_v25  ;;  %1825 = vmatpush3.msra.mxu1 %v754_v17 }
  0xed   : > { %v630_v31 = vmax.f32 %v626_v26, 0.0  ;;  %v625_v32 = vsub.f32 %v617_v28, %v621_v29  ;;  %1826 = vmatprep.subr.mxu1 %v753_v21 }
  0xee   : > { %1865 = vrsqrt.f32 %v633_v30  ;;  %1827 = vmatpush3.msra.mxu1 %v753_v21 }
  0xef   : > { %v636_v33 = vadd.f32 1e-05, %v630_v31  ;;  %v629_v34 = vmax.f32 %v625_v32, 0.0 }
  0xf1   : > { %1867 = vrsqrt.f32 %v636_v33  ;;  %v635_v36 = vadd.f32 1e-05, %v629_v34 }
  0xf3   : > { %1869 = vrsqrt.f32 %v635_v36 }
  0xf9   : > { %v1864_v40 = vpop.eup %1863 }
  0xfa   : > { %v642_v41 = vmul.f32 %v1864_v40, %v631_v38 }
  0xfb   : > { %v1866_v42 = vpop.eup %1865 }
  0xfc   : > { %v646_v44 = vmul.f32 %v642_v41, %v580_v56  ;;  %v664_v45 = vrot.slane %v642_v41, %v2101_v39  ;;  %v641_v46 = vmul.f32 %v1866_v42, %v631_v38 }
  0xfe   : > { %v1868_v47 = vpop.eup %1867  ;;  %v650_v48 = vsub.f32 %v632_v43, %v646_v44  ;;  %v645_v49 = vmul.f32 %v641_v46, %v579_v2  ;;  %v660_v50 = vrot.slane %v641_v46, %v2101_v39  ;;  %v678_v53 = vmul.f32 %v2070_v8, %v664_v45 }
  0xff   : > { %v644_v51 = vmul.f32 %v1868_v47, %v631_v38 }
 0x100   : > { %v1870_v52 = vpop.eup %1869  ;;  %v692_v54 = vrot.slane %v650_v48, %v2101_v39  ;;  %v649_v55 = vsub.f32 %v632_v43, %v645_v49  ;;  %v677_v60 = vmul.f32 %v660_v50, %v2076_v12 }
 0x101   : > { %v648_v57 = vmul.f32 %v644_v51, %v582_v13  ;;  %v672_v58 = vrot.slane %v644_v51, %v2101_v39  ;;  %v643_v59 = vmul.f32 %v1870_v52, %v631_v38 }
 0x102   : > { %v706_v56 = vadd.f32 %v692_v54, %v678_v53  ;;  %v688_v61 = vrot.slane %v649_v55, %v2101_v39 }
 0x103   : > { %v652_v62 = vsub.f32 %v632_v43, %v648_v57  ;;  %v647_v63 = vmul.f32 %v643_v59, %v581_v22  ;;  %v668_v0 = vrot.slane %v643_v59, %v2101_v39  ;;  %v680_v8 = vmul.f32 %v2083_v19, %v672_v58 }
 0x104   : > { %v1755_v1 = vmul.f32 -1.442695, %v706_v56  ;;  %v705_v2 = vadd.f32 %v688_v61, %v677_v60 }
 0x105   : > { %v700_v3 = vrot.slane %v652_v62, %v2101_v39  ;;  %v651_v4 = vsub.f32 %v632_v43, %v647_v63  ;;  %v679_v7 = vmul.f32 %v668_v0, %v2090_v27 }
 0x106   : > { %v1754_v5 = vmul.f32 -1.442695, %v705_v2  ;;  %1871 = vpow2.f32 %v1755_v1 }
 0x107   : > { %v708_v6 = vadd.f32 %v700_v3, %v680_v8  ;;  %v696_v12 = vrot.slane %v651_v4, %v2101_v39 }
 0x108   : > { %1873 = vpow2.f32 %v1754_v5 }
 0x109   : > { %v1757_v9 = vmul.f32 -1.442695, %v708_v6  ;;  %v707_v10 = vadd.f32 %v696_v12, %v679_v7 }
 0x10b   : > { %v1756_v11 = vmul.f32 -1.442695, %v707_v10  ;;  %1875 = vpow2.f32 %v1757_v9 }
 0x10d   : > { %1877 = vpow2.f32 %v1756_v11 }
 0x113   : > { %v1872_v13 = vpop.eup %1871 }
 0x114   : > { %v722_v19 = vadd.f32 1.0, %v1872_v13 }
 0x115   : > { %v1874_v14 = vpop.eup %1873 }
 0x116   : > { %v721_v15 = vadd.f32 1.0, %v1874_v14 }
 0x118   : > { %1879 = vrcp.f32 %v721_v15  ;;  %v1876_v16 = vpop.eup %1875 }
 0x119   : > { %1881 = vrcp.f32 %v722_v19  ;;  %v724_v20 = vadd.f32 1.0, %v1876_v16 }
 0x11a   : > { %v1878_v18 = vpop.eup %1877 }
 0x11b   : > { %v723_v27 = vadd.f32 1.0, %v1878_v18 }
 0x11d   : > { %1883 = vrcp.f32 %v723_v27 }
 0x11e   : > { %1885 = vrcp.f32 %v724_v20 }
 0x125   : > { %v1880_v22 = vpop.eup %1879 }
 0x126   : > { %737 = vrot.lane.b32.xlu0 %v1880_v22, %s1967_s16  ;;  %v1882_v23 = vpop.eup %1881 }
 0x12a   : > { %v1884_v24 = vpop.eup %1883  ;;  %739 = vrot.lane.b32.xlu0 %v1882_v23, %s1967_s16 }
 0x12b   : > { %741 = vrot.lane.b32.xlu1 %v1884_v24, %s1967_s16  ;;  %v1886_v25 = vpop.eup %1885 }
 0x12f   : > { %743 = vrot.lane.b32.xlu1 %v1886_v25, %s1967_s16 }
 0x198   : > { %v738_v26 = vpop.permute.xlu0 %737 }
 0x199   : > { %v2128_v28 = vmul.f32 %v738_v26, %v705_v2 }
 0x19b   : > { %1828 = vmatprep.mubr.msk.f32.mxu1 %vm755_vm1, %v2128_v28 }
 0x19c   : > { %v740_v29 = vpop.permute.xlu0 %739 }
 0x19d   : > { %v2132_v30 = vmul.f32 %v740_v29, %v706_v56  ;;  %v742_v31 = vpop.permute.xlu1 %741 }
 0x19e   : > { %v2134_v32 = vmul.f32 %v742_v31, %v707_v10 }
 0x19f   : > { %1829 = vmatmul.mubr.msk.f32.vlgmr.msra.gmra.mxu1 %vm755_vm1, %v2132_v30 }
 0x1a0   : > { %1831 = vmatprep.mubr.msk.f32.mxu1 %vm755_vm1, %v2134_v32 }
 0x1a1   : > { %v744_v33 = vpop.permute.xlu1 %743 }
 0x1a2   : > { %v2140_v34 = vmul.f32 %v744_v33, %v708_v6 }
 0x1a4   : > { %1832 = vmatmul.mubr.msk.f32.gmra.mxu1 %vm755_vm1, %v2140_v34 }
 0x25f   : > { %v2144_v35 = vpop.f32.mrf.mxu1 }
 0x260   : > { %v860_v36 = vsel %vm452_vm0, %v2144_v35, 0.0  ;;  %v886_v37 = vmul.f32 %v2144_v35, %v2144_v35 }
 0x261   : > { %v861_v38 = vrot.slane %v860_v36, 4  ;;  %v2150_v40 = vpop.f32.mrf.mxu1 }
 0x262   : > { %v896_v41 = vsel %vm452_vm0, %v886_v37, 0.0  ;;  %v853_v42 = vsel %vm452_vm0, %v2150_v40, 0.0  ;;  %v885_v43 = vmul.f32 %v2150_v40, %v2150_v40 }
 0x263   : > { %v862_v44 = vadd.f32 %v861_v38, %v860_v36  ;;  %v897_v45 = vrot.slane %v896_v41, 4  ;;  %v854_v46 = vrot.slane %v853_v42, 4 }
 0x264   : > { %v889_v47 = vsel %vm452_vm0, %v885_v43, 0.0  ;;  %v2158_v48 = vpop.f32.mrf.mxu1 }
 0x265   : > { %v863_v49 = vrot.slane %v862_v44, 2  ;;  %v898_v50 = vadd.f32 %v897_v45, %v896_v41  ;;  %v855_v51 = vadd.f32 %v854_v46, %v853_v42  ;;  %v890_v52 = vrot.slane %v889_v47, 4 }
 0x266   : > { %v874_v53 = vsel %vm452_vm0, %v2158_v48, 0.0  ;;  %v888_v54 = vmul.f32 %v2158_v48, %v2158_v48  ;;  %v2164_v55 = vpop.f32.mrf.mxu1 }
 0x267   : > { %v864_v57 = vadd.f32 %v863_v49, %v862_v44  ;;  %v899_v58 = vrot.slane %v898_v50, 2  ;;  %v856_v59 = vrot.slane %v855_v51, 2  ;;  %v891_v56 = vadd.f32 %v890_v52, %v889_v47 }
 0x268   : > { %v875_v60 = vrot.slane %v874_v53, 4  ;;  %v910_v61 = vsel %vm452_vm0, %v888_v54, 0.0  ;;  %v867_v62 = vsel %vm452_vm0, %v2164_v55, 0.0  ;;  %v887_v63 = vmul.f32 %v2164_v55, %v2164_v55 }
 0x269   : > { %v865_v0 = vrot.slane %v864_v57, 1  ;;  %v900_v1 = vadd.f32 %v899_v58, %v898_v50  ;;  %v857_v2 = vadd.f32 %v856_v59, %v855_v51  ;;  %v892_v8 = vrot.slane %v891_v56, 2 }
 0x26a   : > { %v876_v3 = vadd.f32 %v875_v60, %v874_v53  ;;  %v911_v4 = vrot.slane %v910_v61, 4  ;;  %v868_v5 = vrot.slane %v867_v62, 4  ;;  %v903_v6 = vsel %vm452_vm0, %v887_v63, 0.0 }
 0x26b   : > { %v866_v7 = vadd.f32 %v865_v0, %v864_v57  ;;  %v901_v12 = vrot.slane %v900_v1, 1  ;;  %v858_v9 = vrot.slane %v857_v2, 1  ;;  %v893_v10 = vadd.f32 %v892_v8, %v891_v56 }
 0x26c   : > { %v877_v11 = vrot.slane %v876_v3, 2  ;;  %v912_v13 = vadd.f32 %v911_v4, %v910_v61  ;;  %v869_v14 = vadd.f32 %v868_v5, %v867_v62  ;;  %v904_v15 = vrot.slane %v903_v6, 4  ;;  %v933_v4 = vld [vmem:[%s2367_s5] sm:$0x1] }
 0x26d   : > { %v882_v19 = vmul.f32 0.125, %v866_v7  ;;  %v902_v16 = vadd.f32 %v901_v12, %v900_v1  ;;  %v859_v17 = vadd.f32 %v858_v9, %v857_v2  ;;  %v894_v18 = vrot.slane %v893_v10, 1  ;;  %v934_v12 = vld [vmem:[%s2368_s6] sm:$0x1] }
 0x26e   : > { %v878_v27 = vadd.f32 %v877_v11, %v876_v3  ;;  %v913_v20 = vrot.slane %v912_v13, 2  ;;  %v870_v21 = vrot.slane %v869_v14, 2  ;;  %v905_v22 = vadd.f32 %v904_v15, %v903_v6 }
 0x26f   : > { %v918_v23 = vmul.f32 0.125, %v902_v16  ;;  %v922_v24 = vmul.f32 %v882_v19, %v882_v19  ;;  %v881_v25 = vmul.f32 0.125, %v859_v17  ;;  %v895_v26 = vadd.f32 %v894_v18, %v893_v10 }
 0x270   : > { %v879_v29 = vrot.slane %v878_v27, 1  ;;  %v914_v31 = vadd.f32 %v913_v20, %v912_v13  ;;  %v871_v33 = vadd.f32 %v870_v21, %v869_v14  ;;  %v906_v36 = vrot.slane %v905_v22, 2 }
 0x271   : > { %v926_v37 = vsub.f32 %v918_v23, %v922_v24  ;;  %v917_v38 = vmul.f32 0.125, %v895_v26  ;;  %v921_v41 = vmul.f32 %v881_v25, %v881_v25 }
 0x272   : > { %v880_v42 = vadd.f32 %v879_v29, %v878_v27  ;;  %v915_v43 = vrot.slane %v914_v31, 1  ;;  %v872_v44 = vrot.slane %v871_v33, 1  ;;  %v907_v45 = vadd.f32 %v906_v36, %v905_v22 }
 0x273   : > { %v930_v46 = vmax.f32 %v926_v37, 0.0  ;;  %v925_v47 = vsub.f32 %v917_v38, %v921_v41 }
 0x274   : > { %v884_v49 = vmul.f32 0.125, %v880_v42  ;;  %v916_v50 = vadd.f32 %v915_v43, %v914_v31  ;;  %v873_v51 = vadd.f32 %v872_v44, %v871_v33  ;;  %v908_v52 = vrot.slane %v907_v45, 1 }
 0x275   : > { %v936_v53 = vadd.f32 1e-05, %v930_v46  ;;  %v929_v54 = vmax.f32 %v925_v47, 0.0 }
 0x276   : > { %v920_v57 = vmul.f32 0.125, %v916_v50  ;;  %v924_v58 = vmul.f32 %v884_v49, %v884_v49  ;;  %v883_v59 = vmul.f32 0.125, %v873_v51  ;;  %v909_v56 = vadd.f32 %v908_v52, %v907_v45 }
 0x277   : > { %1887 = vrsqrt.f32 %v936_v53  ;;  %v935_v60 = vadd.f32 1e-05, %v929_v54  ;;  %v1064_v54 = vld [vmem:[%s2369_s7 + $0x8] sm:$0xff] }
 0x278   : > { %v928_v61 = vsub.f32 %v920_v57, %v924_v58  ;;  %v919_v62 = vmul.f32 0.125, %v909_v56  ;;  %v923_v63 = vmul.f32 %v883_v59, %v883_v59  ;;  %1834 = vmatprep.subr.mxu1 %v1064_v54  ;;  %v1063_v58 = vld [vmem:[%s2369_s7] sm:$0xff] }
 0x279   : > { %1889 = vrsqrt.f32 %v935_v60  ;;  %1835 = vmatpush3.msra.mxu1 %v1064_v54 }
 0x27a   : > { %v932_v0 = vmax.f32 %v928_v61, 0.0  ;;  %v927_v1 = vsub.f32 %v919_v62, %v923_v63  ;;  %1836 = vmatprep.subr.mxu1 %v1063_v58 }
 0x27b   : > { %1837 = vmatpush3.msra.mxu1 %v1063_v58 }
 0x27c   : > { %v938_v2 = vadd.f32 1e-05, %v932_v0  ;;  %v931_v8 = vmax.f32 %v927_v1, 0.0 }
 0x27e   : > { %1891 = vrsqrt.f32 %v938_v2  ;;  %v937_v3 = vadd.f32 1e-05, %v931_v8 }
 0x280   : > { %1893 = vrsqrt.f32 %v937_v3 }
 0x284   : > { %v1888_v5 = vpop.eup %1887 }
 0x285   : > { %v944_v6 = vmul.f32 %v1888_v5, %v933_v4 }
 0x286   : > { %v1890_v7 = vpop.eup %1889 }
 0x287   : > { %v948_v9 = vmul.f32 %v944_v6, %v882_v19  ;;  %v966_v10 = vrot.slane %v944_v6, %v2101_v39  ;;  %v943_v11 = vmul.f32 %v1890_v7, %v933_v4 }
 0x289   : > { %v952_v13 = vsub.f32 %v934_v12, %v948_v9  ;;  %v947_v14 = vmul.f32 %v943_v11, %v881_v25  ;;  %v962_v15 = vrot.slane %v943_v11, %v2101_v39  ;;  %v980_v17 = vmul.f32 %v2144_v35, %v966_v10 }
 0x28b   : > { %v1892_v16 = vpop.eup %1891  ;;  %v994_v18 = vrot.slane %v952_v13, %v2101_v39  ;;  %v951_v27 = vsub.f32 %v934_v12, %v947_v14  ;;  %v979_v23 = vmul.f32 %v962_v15, %v2150_v40 }
 0x28c   : > { %v946_v20 = vmul.f32 %v1892_v16, %v933_v4 }
 0x28d   : > { %v1894_v21 = vpop.eup %1893  ;;  %v1008_v22 = vadd.f32 %v994_v18, %v980_v17  ;;  %v990_v19 = vrot.slane %v951_v27, %v2101_v39 }
 0x28e   : > { %v950_v24 = vmul.f32 %v946_v20, %v884_v49  ;;  %v974_v26 = vrot.slane %v946_v20, %v2101_v39  ;;  %v945_v29 = vmul.f32 %v1894_v21, %v933_v4 }
 0x28f   : > { %v1763_v25 = vmul.f32 -1.442695, %v1008_v22  ;;  %v1007_v31 = vadd.f32 %v990_v19, %v979_v23 }
 0x290   : > { %v954_v33 = vsub.f32 %v934_v12, %v950_v24  ;;  %v949_v36 = vmul.f32 %v945_v29, %v883_v59  ;;  %v970_v35 = vrot.slane %v945_v29, %v2101_v39  ;;  %v982_v38 = vmul.f32 %v2158_v48, %v974_v26 }
 0x291   : > { %1895 = vpow2.f32 %v1763_v25  ;;  %v1762_v37 = vmul.f32 -1.442695, %v1007_v31 }
 0x292   : > { %v1002_v41 = vrot.slane %v954_v33, %v2101_v39  ;;  %v953_v42 = vsub.f32 %v934_v12, %v949_v36  ;;  %v981_v43 = vmul.f32 %v970_v35, %v2164_v55 }
 0x293   : > { %1897 = vpow2.f32 %v1762_v37 }
 0x294   : > { %v1010_v40 = vadd.f32 %v1002_v41, %v982_v38  ;;  %v998_v44 = vrot.slane %v953_v42, %v2101_v39 }
 0x296   : > { %v1765_v45 = vmul.f32 -1.442695, %v1010_v40  ;;  %v1009_v46 = vadd.f32 %v998_v44, %v981_v43 }
 0x298   : > { %1899 = vpow2.f32 %v1765_v45  ;;  %v1764_v47 = vmul.f32 -1.442695, %v1009_v46 }
 0x29a   : > { %1901 = vpow2.f32 %v1764_v47 }
 0x29e   : > { %v1896_v49 = vpop.eup %1895 }
 0x29f   : > { %v1024_v50 = vadd.f32 1.0, %v1896_v49 }
 0x2a0   : > { %v1898_v51 = vpop.eup %1897 }
 0x2a1   : > { %1903 = vrcp.f32 %v1024_v50  ;;  %v1023_v52 = vadd.f32 1.0, %v1898_v51 }
 0x2a3   : > { %1905 = vrcp.f32 %v1023_v52 }
 0x2a5   : > { %v1900_v48 = vpop.eup %1899 }
 0x2a6   : > { %v1026_v53 = vadd.f32 1.0, %v1900_v48 }
 0x2a7   : > { %v1902_v55 = vpop.eup %1901 }
 0x2a8   : > { %1907 = vrcp.f32 %v1026_v53  ;;  %v1025_v57 = vadd.f32 1.0, %v1902_v55 }
 0x2aa   : > { %1909 = vrcp.f32 %v1025_v57 }
 0x2ae   : > { %v1904_v59 = vpop.eup %1903 }
 0x2af   : > { %1041 = vrot.lane.b32.xlu1 %v1904_v59, %s1967_s16 }
 0x2b0   : > { %v1906_v56 = vpop.eup %1905 }
 0x2b1   : > { %1039 = vrot.lane.b32.xlu0 %v1906_v56, %s1967_s16 }
 0x2b5   : > { %v1908_v60 = vpop.eup %1907 }
 0x2b6   : > { %1045 = vrot.lane.b32.xlu1 %v1908_v60, %s1967_s16 }
 0x2b7   : > { %v1910_v61 = vpop.eup %1909 }
 0x2b8   : > { %1043 = vrot.lane.b32.xlu0 %v1910_v61, %s1967_s16 }
 0x321   : > { %v1042_v62 = vpop.permute.xlu1 %1041 }
 0x322   : > { %v1052_v63 = vmul.f32 %v1042_v62, %v1008_v22 }
 0x323   : > { %v1040_v0 = vpop.permute.xlu0 %1039 }
 0x324   : > { %v1051_v1 = vmul.f32 %v1040_v0, %v1007_v31  ;;  %v1056_v2 = vadd.f32 %v1052_v63, %v2132_v30 }
 0x326   : > { %v1055_v8 = vadd.f32 %v1051_v1, %v2128_v28  ;;  %v2204_v5 = vmul.f32 0.70710677, %v1056_v2 }
 0x328   : > { %v2202_v3 = vmul.f32 0.70710677, %v1055_v8  ;;  %v1046_v4 = vpop.permute.xlu1 %1045 }
 0x329   : > { %v1054_v6 = vmul.f32 %v1046_v4, %v1010_v40 }
 0x32a   : > { %v1044_v7 = vpop.permute.xlu0 %1043  ;;  %1838 = vmatprep.mubr.msk.f32.mxu1 %vm755_vm1, %v2202_v3 }
 0x32b   : > { %v1053_v12 = vmul.f32 %v1044_v7, %v1009_v46  ;;  %1839 = vmatmul.mubr.msk.f32.vlgmr.msra.gmra.mxu1 %vm755_vm1, %v2204_v5  ;;  %v1058_v9 = vadd.f32 %v1054_v6, %v2140_v34 }
 0x32d   : > { %v1057_v30 = vadd.f32 %v1053_v12, %v2134_v32  ;;  %v2214_v28 = vmul.f32 0.70710677, %v1058_v9 }
 0x32f   : > { %v2212_v10 = vmul.f32 0.70710677, %v1057_v30 }
 0x331   : > { %1841 = vmatprep.mubr.msk.f32.mxu1 %vm755_vm1, %v2212_v10 }
 0x332   : > { %1842 = vmatmul.mubr.msk.f32.gmra.mxu1 %vm755_vm1, %v2214_v28 }
 0x3eb   : > { %v2220_v11 = vpop.f32.mrf.mxu1 }
 0x3ec   : > { %v1169_v13 = vsel %vm452_vm0, %v2220_v11, 0.0  ;;  %v1195_v34 = vmul.f32 %v2220_v11, %v2220_v11 }
 0x3ed   : > { %v1170_v14 = vrot.slane %v1169_v13, 4  ;;  %v2226_v32 = vpop.f32.mrf.mxu1 }
 0x3ee   : > { %v1205_v15 = vsel %vm452_vm0, %v1195_v34, 0.0  ;;  %v1162_v16 = vsel %vm452_vm0, %v2226_v32, 0.0  ;;  %v1194_v17 = vmul.f32 %v2226_v32, %v2226_v32 }
 0x3ef   : > { %v1171_v18 = vadd.f32 %v1170_v14, %v1169_v13  ;;  %v1206_v27 = vrot.slane %v1205_v15, 4  ;;  %v1163_v20 = vrot.slane %v1162_v16, 4 }
 0x3f0   : > { %v1198_v21 = vsel %vm452_vm0, %v1194_v17, 0.0 }
 0x3f1   : > { %v1172_v22 = vrot.slane %v1171_v18, 2  ;;  %v1207_v23 = vadd.f32 %v1206_v27, %v1205_v15  ;;  %v1164_v19 = vadd.f32 %v1163_v20, %v1162_v16  ;;  %v1199_v24 = vrot.slane %v1198_v21, 4 }
 0x3f2   : > { %v2234_v26 = vpop.f32.mrf.mxu1 }
 0x3f3   : > { %v1173_v29 = vadd.f32 %v1172_v22, %v1171_v18  ;;  %v1208_v25 = vrot.slane %v1207_v23, 2  ;;  %v1165_v31 = vrot.slane %v1164_v19, 2  ;;  %v1200_v33 = vadd.f32 %v1199_v24, %v1198_v21 }
 0x3f4   : > { %v1183_v36 = vsel %vm452_vm0, %v2234_v26, 0.0  ;;  %v1197_v35 = vmul.f32 %v2234_v26, %v2234_v26  ;;  %v2240_v37 = vpop.f32.mrf.mxu1 }
 0x3f5   : > { %v1174_v38 = vrot.slane %v1173_v29, 1  ;;  %v1209_v41 = vadd.f32 %v1208_v25, %v1207_v23  ;;  %v1166_v42 = vadd.f32 %v1165_v31, %v1164_v19  ;;  %v1201_v40 = vrot.slane %v1200_v33, 2 }
 0x3f6   : > { %v1184_v43 = vrot.slane %v1183_v36, 4  ;;  %v1219_v44 = vsel %vm452_vm0, %v1197_v35, 0.0  ;;  %v1176_v45 = vsel %vm452_vm0, %v2240_v37, 0.0  ;;  %v1196_v46 = vmul.f32 %v2240_v37, %v2240_v37 }
 0x3f7   : > { %v1175_v47 = vadd.f32 %v1174_v38, %v1173_v29  ;;  %v1210_v49 = vrot.slane %v1209_v41, 1  ;;  %v1167_v50 = vrot.slane %v1166_v42, 1  ;;  %v1202_v51 = vadd.f32 %v1201_v40, %v1200_v33 }
 0x3f8   : > { %v1185_v52 = vadd.f32 %v1184_v43, %v1183_v36  ;;  %v1220_v48 = vrot.slane %v1219_v44, 4  ;;  %v1177_v53 = vrot.slane %v1176_v45, 4  ;;  %v1212_v54 = vsel %vm452_vm0, %v1196_v46, 0.0 }
 0x3f9   : > { %v1191_v55 = vmul.f32 0.125, %v1175_v47  ;;  %v1211_v57 = vadd.f32 %v1210_v49, %v1209_v41  ;;  %v1168_v58 = vadd.f32 %v1167_v50, %v1166_v42  ;;  %v1203_v59 = vrot.slane %v1202_v51, 1  ;;  %v1242_v49 = vld [vmem:[%s2370_s8] sm:$0x1] }
 0x3fa   : > { %v1186_v56 = vrot.slane %v1185_v52, 2  ;;  %v1221_v60 = vadd.f32 %v1220_v48, %v1219_v44  ;;  %v1178_v61 = vadd.f32 %v1177_v53, %v1176_v45  ;;  %v1213_v62 = vrot.slane %v1212_v54, 4  ;;  %v1243_v48 = vld [vmem:[%s2371_s9] sm:$0x1] }
 0x3fb   : > { %v1227_v63 = vmul.f32 0.125, %v1211_v57  ;;  %v1231_v0 = vmul.f32 %v1191_v55, %v1191_v55  ;;  %v1190_v1 = vmul.f32 0.125, %v1168_v58  ;;  %v1204_v2 = vadd.f32 %v1203_v59, %v1202_v51 }
 0x3fc   : > { %v1187_v8 = vadd.f32 %v1186_v56, %v1185_v52  ;;  %v1222_v4 = vrot.slane %v1221_v60, 2  ;;  %v1179_v6 = vrot.slane %v1178_v61, 2  ;;  %v1214_v7 = vadd.f32 %v1213_v62, %v1212_v54 }
 0x3fd   : > { %v1235_v12 = vsub.f32 %v1227_v63, %v1231_v0  ;;  %v1226_v9 = vmul.f32 0.125, %v1204_v2  ;;  %v1230_v30 = vmul.f32 %v1190_v1, %v1190_v1 }
 0x3fe   : > { %v1188_v13 = vrot.slane %v1187_v8, 1  ;;  %v1223_v34 = vadd.f32 %v1222_v4, %v1221_v60  ;;  %v1180_v14 = vadd.f32 %v1179_v6, %v1178_v61  ;;  %v1215_v15 = vrot.slane %v1214_v7, 2 }
 0x3ff   : > { %v1239_v16 = vmax.f32 %v1235_v12, 0.0  ;;  %v1234_v17 = vsub.f32 %v1226_v9, %v1230_v30 }
 0x400   : > { %v1189_v18 = vadd.f32 %v1188_v13, %v1187_v8  ;;  %v1224_v27 = vrot.slane %v1223_v34, 1  ;;  %v1181_v20 = vrot.slane %v1180_v14, 1  ;;  %v1216_v21 = vadd.f32 %v1215_v15, %v1214_v7 }
 0x401   : > { %v1245_v22 = vadd.f32 1e-05, %v1239_v16  ;;  %v1238_v23 = vmax.f32 %v1234_v17, 0.0 }
 0x402   : > { %v1193_v19 = vmul.f32 0.125, %v1189_v18  ;;  %v1225_v24 = vadd.f32 %v1224_v27, %v1223_v34  ;;  %v1182_v29 = vadd.f32 %v1181_v20, %v1180_v14  ;;  %v1217_v25 = vrot.slane %v1216_v21, 1 }
 0x403   : > { %1911 = vrsqrt.f32 %v1245_v22  ;;  %v1244_v31 = vadd.f32 1e-05, %v1238_v23 }
 0x404   : > { %v1229_v33 = vmul.f32 0.125, %v1225_v24  ;;  %v1233_v36 = vmul.f32 %v1193_v19, %v1193_v19  ;;  %v1192_v35 = vmul.f32 0.125, %v1182_v29  ;;  %v1218_v38 = vadd.f32 %v1217_v25, %v1216_v21 }
 0x405   : > { %1913 = vrsqrt.f32 %v1244_v31 }
 0x406   : > { %v1237_v41 = vsub.f32 %v1229_v33, %v1233_v36  ;;  %v1228_v42 = vmul.f32 0.125, %v1218_v38  ;;  %v1232_v40 = vmul.f32 %v1192_v35, %v1192_v35  ;;  %v1372_v33 = vld [vmem:[%s2372_s10] sm:$0xff] }
 0x408   : > { %v1241_v43 = vmax.f32 %v1237_v41, 0.0  ;;  %v1236_v44 = vsub.f32 %v1228_v42, %v1232_v40 }
 0x40a   : > { %v1247_v45 = vadd.f32 1e-05, %v1241_v43  ;;  %v1240_v46 = vmax.f32 %v1236_v44, 0.0 }
 0x40c   : > { %1915 = vrsqrt.f32 %v1247_v45  ;;  %v1246_v47 = vadd.f32 1e-05, %v1240_v46 }
 0x40e   : > { %1917 = vrsqrt.f32 %v1246_v47 }
 0x410   : > { %v1912_v50 = vpop.eup %1911 }
 0x411   : > { %v1253_v51 = vmul.f32 %v1912_v50, %v1242_v49 }
 0x412   : > { %v1914_v52 = vpop.eup %1913 }
 0x413   : > { %v1257_v53 = vmul.f32 %v1253_v51, %v1191_v55  ;;  %v1275_v54 = vrot.slane %v1253_v51, %v2101_v39  ;;  %v1252_v57 = vmul.f32 %v1914_v52, %v1242_v49 }
 0x415   : > { %v1261_v58 = vsub.f32 %v1243_v48, %v1257_v53  ;;  %v1256_v59 = vmul.f32 %v1252_v57, %v1190_v1  ;;  %v1271_v56 = vrot.slane %v1252_v57, %v2101_v39  ;;  %v1289_v60 = vmul.f32 %v2220_v11, %v1275_v54 }
 0x417   : > { %v1303_v61 = vrot.slane %v1261_v58, %v2101_v39  ;;  %v1260_v62 = vsub.f32 %v1243_v48, %v1256_v59  ;;  %v1288_v2 = vmul.f32 %v1271_v56, %v2226_v32 }
 0x419   : > { %v1916_v63 = vpop.eup %1915  ;;  %v1317_v0 = vadd.f32 %v1303_v61, %v1289_v60  ;;  %v1299_v8 = vrot.slane %v1260_v62, %v2101_v39 }
 0x41a   : > { %v1255_v4 = vmul.f32 %v1916_v63, %v1242_v49 }
 0x41b   : > { %v1918_v55 = vpop.eup %1917  ;;  %v1771_v6 = vmul.f32 -1.442695, %v1317_v0  ;;  %v1316_v7 = vadd.f32 %v1299_v8, %v1288_v2 }
 0x41c   : > { %v1259_v12 = vmul.f32 %v1255_v4, %v1193_v19  ;;  %v1283_v1 = vrot.slane %v1255_v4, %v2101_v39  ;;  %v1254_v9 = vmul.f32 %v1918_v55, %v1242_v49 }
 0x41d   : > { %1919 = vpow2.f32 %v1771_v6  ;;  %v1770_v30 = vmul.f32 -1.442695, %v1316_v7 }
 0x41e   : > { %v1263_v11 = vsub.f32 %v1243_v48, %v1259_v12  ;;  %v1258_v13 = vmul.f32 %v1254_v9, %v1192_v35  ;;  %v1279_v34 = vrot.slane %v1254_v9, %v2101_v39  ;;  %v1291_v14 = vmul.f32 %v2234_v26, %v1283_v1  ;;  %v1373_v26 = vld [vmem:[%s2372_s10 + $0x8] sm:$0xff] }
 0x41f   : > { %1921 = vpow2.f32 %v1770_v30  ;;  %1844 = vmatprep.subr.mxu0 %v1373_v26 }
 0x420   : > { %v1311_v32 = vrot.slane %v1263_v11, %v2101_v39  ;;  %v1262_v15 = vsub.f32 %v1243_v48, %v1258_v13  ;;  %v1290_v17 = vmul.f32 %v1279_v34, %v2240_v37  ;;  %1845 = vmatpush3.msra.mxu0 %v1373_v26 }
 0x421   : > { %1846 = vmatprep.subr.mxu0 %v1372_v33 }
 0x422   : > { %v1319_v16 = vadd.f32 %v1311_v32, %v1291_v14  ;;  %v1307_v18 = vrot.slane %v1262_v15, %v2101_v39  ;;  %1847 = vmatpush3.msra.mxu0 %v1372_v33 }
 0x424   : > { %v1773_v27 = vmul.f32 -1.442695, %v1319_v16  ;;  %v1318_v20 = vadd.f32 %v1307_v18, %v1290_v17 }
 0x426   : > { %1923 = vpow2.f32 %v1773_v27  ;;  %v1772_v21 = vmul.f32 -1.442695, %v1318_v20 }
 0x428   : > { %1925 = vpow2.f32 %v1772_v21 }
 0x42a   : > { %v1920_v22 = vpop.eup %1919 }
 0x42b   : > { %v1333_v23 = vadd.f32 1.0, %v1920_v22 }
 0x42c   : > { %v1922_v19 = vpop.eup %1921 }
 0x42d   : > { %1927 = vrcp.f32 %v1333_v23  ;;  %v1332_v24 = vadd.f32 1.0, %v1922_v19 }
 0x42f   : > { %1929 = vrcp.f32 %v1332_v24 }
 0x433   : > { %v1924_v29 = vpop.eup %1923 }
 0x434   : > { %v1335_v37 = vadd.f32 1.0, %v1924_v29 }
 0x435   : > { %v1926_v25 = vpop.eup %1925 }
 0x436   : > { %1931 = vrcp.f32 %v1335_v37  ;;  %v1334_v31 = vadd.f32 1.0, %v1926_v25 }
 0x438   : > { %1933 = vrcp.f32 %v1334_v31 }
 0x43a   : > { %v1928_v36 = vpop.eup %1927 }
 0x43b   : > { %1350 = vrot.lane.b32.xlu1 %v1928_v36, %s1967_s16 }
 0x43c   : > { %v1930_v35 = vpop.eup %1929 }
 0x43d   : > { %1348 = vrot.lane.b32.xlu0 %v1930_v35, %s1967_s16 }
 0x443   : > { %v1932_v38 = vpop.eup %1931 }
 0x444   : > { %1354 = vrot.lane.b32.xlu1 %v1932_v38, %s1967_s16 }
 0x445   : > { %v1934_v41 = vpop.eup %1933 }
 0x446   : > { %1352 = vrot.lane.b32.xlu0 %v1934_v41, %s1967_s16 }
 0x4ad   : > { %v1351_v42 = vpop.permute.xlu1 %1350 }
 0x4ae   : > { %v1361_v40 = vmul.f32 %v1351_v42, %v1317_v0 }
 0x4af   : > { %v1349_v43 = vpop.permute.xlu0 %1348 }
 0x4b0   : > { %v1360_v44 = vmul.f32 %v1349_v43, %v1316_v7  ;;  %v1365_v45 = vadd.f32 %v1361_v40, %v2204_v5 }
 0x4b2   : > { %v1364_v46 = vadd.f32 %v1360_v44, %v2202_v3  ;;  %v2280_v49 = vmul.f32 0.70710677, %v1365_v45 }
 0x4b4   : > { %v2278_v47 = vmul.f32 0.70710677, %v1364_v46 }
 0x4b6   : > { %v1355_v50 = vpop.permute.xlu1 %1354  ;;  %1848 = vmatprep.mubr.msk.f32.mxu0 %vm755_vm1, %v2278_v47 }
 0x4b7   : > { %v1363_v51 = vmul.f32 %v1355_v50, %v1319_v16  ;;  %1849 = vmatmul.mubr.msk.f32.vlgmr.msra.gmra.mxu0 %vm755_vm1, %v2280_v49 }
 0x4b8   : > { %v1353_v52 = vpop.permute.xlu0 %1352 }
 0x4b9   : > { %v1362_v48 = vmul.f32 %v1353_v52, %v1318_v20  ;;  %v1367_v53 = vadd.f32 %v1363_v51, %v2214_v28 }
 0x4bb   : > { %v1366_v5 = vadd.f32 %v1362_v48, %v2212_v10  ;;  %v2290_v3 = vmul.f32 0.70710677, %v1367_v53 }
 0x4bd   : > { %v2288_v54 = vmul.f32 0.70710677, %v1366_v5 }
 0x4bf   : > { %1851 = vmatprep.mubr.msk.f32.mxu0 %vm755_vm1, %v2288_v54 }
 0x4c0   : > { %1852 = vmatmul.mubr.msk.f32.gmra.mxu0 %vm755_vm1, %v2290_v3 }
 0x577   : > { %v2296_v57 = vpop.f32.mrf.mxu0 }
 0x578   : > { %v1478_v58 = vsel %vm452_vm0, %v2296_v57, 0.0  ;;  %v1504_v28 = vmul.f32 %v2296_v57, %v2296_v57 }
 0x579   : > { %v1479_v59 = vrot.slane %v1478_v58, 4  ;;  %v2302_v10 = vpop.f32.mrf.mxu0 }
 0x57a   : > { %v1514_v56 = vsel %vm452_vm0, %v1504_v28, 0.0  ;;  %v1471_v60 = vsel %vm452_vm0, %v2302_v10, 0.0  ;;  %v1503_v61 = vmul.f32 %v2302_v10, %v2302_v10 }
 0x57b   : > { %v1480_v62 = vadd.f32 %v1479_v59, %v1478_v58  ;;  %v1515_v63 = vrot.slane %v1514_v56, 4  ;;  %v1472_v0 = vrot.slane %v1471_v60, 4 }
 0x57c   : > { %v1507_v2 = vsel %vm452_vm0, %v1503_v61, 0.0 }
 0x57d   : > { %v1481_v8 = vrot.slane %v1480_v62, 2  ;;  %v1516_v4 = vadd.f32 %v1515_v63, %v1514_v56  ;;  %v1473_v55 = vadd.f32 %v1472_v0, %v1471_v60  ;;  %v1508_v6 = vrot.slane %v1507_v2, 4 }
 0x57f   : > { %v1482_v7 = vadd.f32 %v1481_v8, %v1480_v62  ;;  %v1517_v12 = vrot.slane %v1516_v4, 2  ;;  %v1474_v1 = vrot.slane %v1473_v55, 2  ;;  %v1509_v9 = vadd.f32 %v1508_v6, %v1507_v2 }
 0x580   : > { %v2310_v30 = vpop.f32.mrf.mxu0 }
 0x581   : > { %v1483_v11 = vrot.slane %v1482_v7, 1  ;;  %v1518_v13 = vadd.f32 %v1517_v12, %v1516_v4  ;;  %v1475_v34 = vadd.f32 %v1474_v1, %v1473_v55  ;;  %v1510_v14 = vrot.slane %v1509_v9, 2 }
 0x582   : > { %v1492_v32 = vsel %vm452_vm0, %v2310_v30, 0.0  ;;  %v1506_v15 = vmul.f32 %v2310_v30, %v2310_v30  ;;  %v2316_v16 = vpop.f32.mrf.mxu0 }
 0x583   : > { %v1484_v17 = vadd.f32 %v1483_v11, %v1482_v7  ;;  %v1519_v18 = vrot.slane %v1518_v13, 1  ;;  %v1476_v27 = vrot.slane %v1475_v34, 1  ;;  %v1511_v20 = vadd.f32 %v1510_v14, %v1509_v9 }
 0x584   : > { %v1493_v21 = vrot.slane %v1492_v32, 4  ;;  %v1528_v22 = vsel %vm452_vm0, %v1506_v15, 0.0  ;;  %v1485_v23 = vsel %vm452_vm0, %v2316_v16, 0.0  ;;  %v1505_v19 = vmul.f32 %v2316_v16, %v2316_v16 }
 0x585   : > { %v1500_v24 = vmul.f32 0.125, %v1484_v17  ;;  %v1520_v26 = vadd.f32 %v1519_v18, %v1518_v13  ;;  %v1477_v29 = vadd.f32 %v1476_v27, %v1475_v34  ;;  %v1512_v37 = vrot.slane %v1511_v20, 1 }
 0x586   : > { %v1494_v25 = vadd.f32 %v1493_v21, %v1492_v32  ;;  %v1529_v31 = vrot.slane %v1528_v22, 4  ;;  %v1486_v33 = vrot.slane %v1485_v23, 4  ;;  %v1521_v36 = vsel %vm452_vm0, %v1505_v19, 0.0  ;;  %v1551_v21 = vld [vmem:[%s2373_s11] sm:$0x1] }
 0x587   : > { %v1536_v35 = vmul.f32 0.125, %v1520_v26  ;;  %v1540_v38 = vmul.f32 %v1500_v24, %v1500_v24  ;;  %v1499_v41 = vmul.f32 0.125, %v1477_v29  ;;  %v1513_v42 = vadd.f32 %v1512_v37, %v1511_v20  ;;  %v1552_v29 = vld [vmem:[%s2374_s12] sm:$0x1] }
 0x588   : > { %v1495_v40 = vrot.slane %v1494_v25, 2  ;;  %v1530_v43 = vadd.f32 %v1529_v31, %v1528_v22  ;;  %v1487_v44 = vadd.f32 %v1486_v33, %v1485_v23  ;;  %v1522_v45 = vrot.slane %v1521_v36, 4 }
 0x589   : > { %v1544_v46 = vsub.f32 %v1536_v35, %v1540_v38  ;;  %v1535_v50 = vmul.f32 0.125, %v1513_v42  ;;  %v1539_v51 = vmul.f32 %v1499_v41, %v1499_v41 }
 0x58a   : > { %v1496_v52 = vadd.f32 %v1495_v40, %v1494_v25  ;;  %v1531_v48 = vrot.slane %v1530_v43, 2  ;;  %v1488_v53 = vrot.slane %v1487_v44, 2  ;;  %v1523_v5 = vadd.f32 %v1522_v45, %v1521_v36 }
 0x58b   : > { %v1548_v58 = vmax.f32 %v1544_v46, 0.0  ;;  %v1543_v28 = vsub.f32 %v1535_v50, %v1539_v51 }
 0x58c   : > { %v1497_v59 = vrot.slane %v1496_v52, 1  ;;  %v1532_v56 = vadd.f32 %v1531_v48, %v1530_v43  ;;  %v1489_v60 = vadd.f32 %v1488_v53, %v1487_v44  ;;  %v1524_v61 = vrot.slane %v1523_v5, 2 }
 0x58d   : > { %v1554_v62 = vadd.f32 1e-05, %v1548_v58  ;;  %v1547_v63 = vmax.f32 %v1543_v28, 0.0 }
 0x58e   : > { %v1498_v0 = vadd.f32 %v1497_v59, %v1496_v52  ;;  %v1533_v2 = vrot.slane %v1532_v56, 1  ;;  %v1490_v8 = vrot.slane %v1489_v60, 1  ;;  %v1525_v4 = vadd.f32 %v1524_v61, %v1523_v5 }
 0x58f   : > { %1935 = vrsqrt.f32 %v1554_v62  ;;  %v1553_v55 = vadd.f32 1e-05, %v1547_v63 }
 0x590   : > { %v1502_v6 = vmul.f32 0.125, %v1498_v0  ;;  %v1534_v7 = vadd.f32 %v1533_v2, %v1532_v56  ;;  %v1491_v12 = vadd.f32 %v1490_v8, %v1489_v60  ;;  %v1526_v1 = vrot.slane %v1525_v4, 1 }
 0x591   : > { %1937 = vrsqrt.f32 %v1553_v55 }
 0x592   : > { %v1538_v9 = vmul.f32 0.125, %v1534_v7  ;;  %v1542_v11 = vmul.f32 %v1502_v6, %v1502_v6  ;;  %v1501_v13 = vmul.f32 0.125, %v1491_v12  ;;  %v1527_v34 = vadd.f32 %v1526_v1, %v1525_v4 }
 0x594   : > { %v1546_v14 = vsub.f32 %v1538_v9, %v1542_v11  ;;  %v1537_v32 = vmul.f32 0.125, %v1527_v34  ;;  %v1541_v15 = vmul.f32 %v1501_v13, %v1501_v13 }
 0x596   : > { %v1550_v17 = vmax.f32 %v1546_v14, 0.0  ;;  %v1545_v18 = vsub.f32 %v1537_v32, %v1541_v15 }
 0x598   : > { %v1556_v27 = vadd.f32 1e-05, %v1550_v17  ;;  %v1549_v20 = vmax.f32 %v1545_v18, 0.0 }
 0x59a   : > { %1939 = vrsqrt.f32 %v1556_v27  ;;  %v1555_v22 = vadd.f32 1e-05, %v1549_v20 }
 0x59c   : > { %v1936_v23 = vpop.eup %1935  ;;  %1941 = vrsqrt.f32 %v1555_v22 }
 0x59d   : > { %v1562_v19 = vmul.f32 %v1936_v23, %v1551_v21 }
 0x59e   : > { %v1938_v26 = vpop.eup %1937 }
 0x59f   : > { %v1566_v37 = vmul.f32 %v1562_v19, %v1500_v24  ;;  %v1584_v25 = vrot.slane %v1562_v19, %v2101_v39  ;;  %v1561_v31 = vmul.f32 %v1938_v26, %v1551_v21 }
 0x5a1   : > { %v1570_v33 = vsub.f32 %v1552_v29, %v1566_v37  ;;  %v1565_v36 = vmul.f32 %v1561_v31, %v1499_v41  ;;  %v1580_v35 = vrot.slane %v1561_v31, %v2101_v39  ;;  %v1598_v38 = vmul.f32 %v2296_v57, %v1584_v25 }
 0x5a3   : > { %v1612_v42 = vrot.slane %v1570_v33, %v2101_v39  ;;  %v1569_v40 = vsub.f32 %v1552_v29, %v1565_v36  ;;  %v1597_v44 = vmul.f32 %v1580_v35, %v2302_v10 }
 0x5a5   : > { %v1626_v43 = vadd.f32 %v1612_v42, %v1598_v38  ;;  %v1608_v45 = vrot.slane %v1569_v40, %v2101_v39 }
 0x5a7   : > { %v1940_v46 = vpop.eup %1939  ;;  %v1779_v50 = vmul.f32 -1.442695, %v1626_v43  ;;  %v1625_v24 = vadd.f32 %v1608_v45, %v1597_v44 }
 0x5a8   : > { %v1564_v51 = vmul.f32 %v1940_v46, %v1551_v21 }
 0x5a9   : > { %v1942_v52 = vpop.eup %1941  ;;  %1943 = vpow2.f32 %v1779_v50  ;;  %v1778_v48 = vmul.f32 -1.442695, %v1625_v24 }
 0x5aa   : > { %v1568_v41 = vmul.f32 %v1564_v51, %v1502_v6  ;;  %v1592_v53 = vrot.slane %v1564_v51, %v2101_v39  ;;  %v1563_v5 = vmul.f32 %v1942_v52, %v1551_v21 }
 0x5ab   : > { %1945 = vpow2.f32 %v1778_v48 }
 0x5ac   : > { %v1572_v57 = vsub.f32 %v1552_v29, %v1568_v41  ;;  %v1567_v58 = vmul.f32 %v1563_v5, %v1501_v13  ;;  %v1588_v28 = vrot.slane %v1563_v5, %v2101_v39  ;;  %v1600_v10 = vmul.f32 %v2310_v30, %v1592_v53 }
 0x5ae   : > { %v1620_v59 = vrot.slane %v1572_v57, %v2101_v39  ;;  %v1571_v56 = vsub.f32 %v1552_v29, %v1567_v58  ;;  %v1599_v61 = vmul.f32 %v1588_v28, %v2316_v16 }
 0x5b0   : > { %v1628_v60 = vadd.f32 %v1620_v59, %v1600_v10  ;;  %v1616_v62 = vrot.slane %v1571_v56, %v2101_v39 }
 0x5b2   : > { %v1781_v63 = vmul.f32 -1.442695, %v1628_v60  ;;  %v1627_v0 = vadd.f32 %v1616_v62, %v1599_v61 }
 0x5b4   : > { %1947 = vpow2.f32 %v1781_v63  ;;  %v1780_v2 = vmul.f32 -1.442695, %v1627_v0 }
 0x5b6   : > { %v1944_v8 = vpop.eup %1943  ;;  %1949 = vpow2.f32 %v1780_v2 }
 0x5b7   : > { %v1642_v4 = vadd.f32 1.0, %v1944_v8 }
 0x5b8   : > { %v1946_v55 = vpop.eup %1945 }
 0x5b9   : > { %1951 = vrcp.f32 %v1642_v4  ;;  %v1641_v6 = vadd.f32 1.0, %v1946_v55 }
 0x5bb   : > { %1953 = vrcp.f32 %v1641_v6 }
 0x5c1   : > { %v1948_v30 = vpop.eup %1947 }
 0x5c2   : > { %v1644_v7 = vadd.f32 1.0, %v1948_v30 }
 0x5c3   : > { %v1950_v12 = vpop.eup %1949 }
 0x5c4   : > { %1955 = vrcp.f32 %v1644_v7  ;;  %v1643_v1 = vadd.f32 1.0, %v1950_v12 }
 0x5c6   : > { %v1952_v16 = vpop.eup %1951  ;;  %1957 = vrcp.f32 %v1643_v1 }
 0x5c7   : > { %1659 = vrot.lane.b32.xlu1 %v1952_v16, %s1967_s16 }
 0x5c8   : > { %v1954_v39 = vpop.eup %1953 }
 0x5c9   : > { %1657 = vrot.lane.b32.xlu0 %v1954_v39, %s1967_s16 }
 0x5d1   : > { %v1956_v9 = vpop.eup %1955 }
 0x5d2   : > { %1663 = vrot.lane.b32.xlu1 %v1956_v9, %s1967_s16 }
 0x5d3   : > { %v1958_v11 = vpop.eup %1957 }
 0x5d4   : > { %1661 = vrot.lane.b32.xlu0 %v1958_v11, %s1967_s16 }
 0x639   : > { %v1660_v13 = vpop.permute.xlu1 %1659 }
 0x63a   : > { %v1670_v34 = vmul.f32 %v1660_v13, %v1626_v43 }
 0x63b   : > { %v1658_v14 = vpop.permute.xlu0 %1657 }
 0x63c   : > { %v1669_v32 = vmul.f32 %v1658_v14, %v1625_v24  ;;  %v1674_v15 = vadd.f32 %v1670_v34, %v2280_v49 }
 0x63e   : > { %v1673_v17 = vadd.f32 %v1669_v32, %v2278_v47  ;;  %v1678_v27 = vmul.f32 0.70710677, %v1674_v15 }
 0x640   : > { %v1677_v18 = vmul.f32 0.70710677, %v1673_v17  ;;  %1682 = vst.msk [vmem:[%s442_s28 + $0x8] sm:$0xff] %vm755_vm1, %v1678_v27 }
 0x642   : > { %1681 = vst.msk [vmem:[%s442_s28] sm:$0xff] %vm755_vm1, %v1677_v18 }
 0x644   : > { %v1664_v20 = vpop.permute.xlu1 %1663 }
 0x645   : > { %v1672_v21 = vmul.f32 %v1664_v20, %v1628_v60 }
 0x646   : > { %v1662_v22 = vpop.permute.xlu0 %1661 }
 0x647   : > { %v1671_v23 = vmul.f32 %v1662_v22, %v1627_v0  ;;  %v1676_v19 = vadd.f32 %v1672_v21, %v2290_v3 }
 0x649   : > { %v1675_v49 = vadd.f32 %v1671_v23, %v2288_v54  ;;  %v1680_v26 = vmul.f32 0.70710677, %v1676_v19 }
 0x64b   : > { %v1679_v47 = vmul.f32 0.70710677, %v1675_v49  ;;  %1684 = vst.msk [vmem:[%s442_s28 + $0x18] sm:$0xff] %vm755_vm1, %v1680_v26 }
 0x64d   : > { %1683 = vst.msk [vmem:[%s442_s28 + $0x10] sm:$0xff] %vm755_vm1, %v1679_v47 }
 0x64e PF: > { %s23_s25 = sadd.s32 1, %s1965_s25  }
 0x64f   : > { %p20_p4 = scmp.ge.s32.totalorder %s23_s25, 4  }
 0x651   :  { %22 = sbr.rel (!%p20_p4) target bundleno = 1 (0x1), region = 102 }

</bundles_post_ra>
